<compile_context>
chip_gen: v6e
topology: v6e:2x2x1
jax: 0.10.0
libtpu: 0.0.40
codegen_flags: <defaults>
</compile_context>

<pallas_src>
import jax
import jax.numpy as jnp
from jax.experimental import pallas as pl
from jax.experimental.pallas import tpu as pltpu


# ---------------------------------------------------------------------------
# Kernel: 6 fused (matmul + bias [+ ReLU]) stages, BN/Dropout already folded.
# ---------------------------------------------------------------------------
def mlp_kernel(x_ref,
               w1_ref, b1_ref,
               w2_ref, b2_ref,
               w3_ref, b3_ref,
               w4_ref, b4_ref,
               w5_ref, b5_ref,
               w6_ref, b6_ref,
               o_ref):
    f32 = jnp.float32
    bf16 = jnp.bfloat16

    def dense_relu(h, w_ref, b_ref):
        # bf16 x bf16 -> f32 accumulation on the MXU; bias + ReLU in f32,
        # then back to bf16 so inter-layer activations stay half-width.
        y = jnp.dot(h, w_ref[...], preferred_element_type=f32)
        return jnp.maximum(y + b_ref[...], 0.0).astype(bf16)

    h = x_ref[...]                       # bf16 (tb, 784), fed straight to the MXU
    h = dense_relu(h, w1_ref, b1_ref)    # (input BN + dropout folded) 784 -> 512
    h = dense_relu(h, w2_ref, b2_ref)    # 512 -> 384   (its BN folded into w3)
    h = dense_relu(h, w3_ref, b3_ref)    # 384 -> 256   (its BN folded into w4)
    h = dense_relu(h, w4_ref, b4_ref)    # 256 -> 128   (its BN folded into w5)
    h = dense_relu(h, w5_ref, b5_ref)    # 128 -> 64, zero-padded to 128 lanes
    # head: 64 -> 10, padded to 128 output lanes; lane-dense bf16 store.
    o_ref[...] = (jnp.dot(h, w6_ref[...], preferred_element_type=f32)
                  + b6_ref[...]).astype(o_ref.dtype)


# ---------------------------------------------------------------------------
# Wrapper
# ---------------------------------------------------------------------------
def _round_up(a, m):
    return (a + m - 1) // m * m


def complex_nn_forward(x, prepared_params, *, num_classes=10, tb=None):
    """x: any tensor with a leading batch dim; flattened to (B, 784)."""
    B = x.shape[0]
    x2d = x.reshape(B, -1).astype(jnp.bfloat16)          # stream input as bf16
    in_dim = x2d.shape[1]
    out_pad = prepared_params[-1].shape[1]               # lane-padded head width (128)

    # Batch-tile selection:
    #   * multiple of 16 rows (bf16 sublane packing of the input/output tiles)
    #   * >= 2 grid steps whenever B >= 32 (v7x: both TensorCores get work)
    #   * capped at 1024 rows (v6e per-step-overhead amortization, VMEM-safe everywhere)
    if tb is None:
        tb = min(1024, _round_up(pl.cdiv(B, 2), 16))
    tb = _round_up(min(tb, 1024), 16)
    B_pad = _round_up(B, tb)
    if B_pad != B:
        x2d = jnp.pad(x2d, ((0, B_pad - B), (0, 0)))

    grid = (B_pad // tb,)

    x_spec = pl.BlockSpec((tb, in_dim), lambda i: (i, 0))
    # Constant index_map -> each parameter is DMA'd to VMEM once and revisited.
    param_specs = [pl.BlockSpec(p.shape, lambda i: (0, 0)) for p in prepared_params]
    out_spec = pl.BlockSpec((tb, out_pad), lambda i: (i, 0))

    # Advisory cost estimate for the XLA scheduler.
    weights = prepared_params[0::2]
    flops = 2 * B_pad * sum(int(w.shape[0]) * int(w.shape[1]) for w in weights)
    bytes_accessed = (sum(int(p.size) * p.dtype.itemsize for p in prepared_params)
                      + int(x2d.size) * x2d.dtype.itemsize
                      + B_pad * out_pad * 2)

    out = pl.pallas_call(
        mlp_kernel,
        out_shape=jax.ShapeDtypeStruct((B_pad, out_pad), jnp.bfloat16),
        grid_spec=pltpu.PrefetchScalarGridSpec(
            num_scalar_prefetch=0,
            grid=grid,
            in_specs=[x_spec] + param_specs,
            out_specs=out_spec,
        ),
        compiler_params=pltpu.CompilerParams(
            dimension_semantics=("parallel",),
            vmem_limit_bytes=48 << 20,
        ),
        cost_estimate=pl.CostEstimate(
            flops=flops, transcendentals=0, bytes_accessed=bytes_accessed),
    )(x2d, *prepared_params)

    return out[:B, :num_classes].astype(jnp.float32)


# ---------------------------------------------------------------------------
# Parameters (synthetic, shapes matching ComplexNN.__init__)
# ---------------------------------------------------------------------------
def init_params(key,
                input_dim=784,
                hidden_dims=(512, 384, 256, 128),
                num_classes=10,
                eps=1e-5):
    """Raw params: Linear weights stored pre-transposed as (in, out); each
    BatchNorm1d's running stats + affine pre-reduced to a (scale, shift) row."""
    keys = list(jax.random.split(key, 40))
    kit = iter(keys)

    def linear(fan_in, fan_out):
        bound = 1.0 / float(fan_in) ** 0.5
        w = jax.random.uniform(next(kit), (fan_in, fan_out), jnp.float32, -bound, bound)
        b = jax.random.uniform(next(kit), (1, fan_out), jnp.float32, -bound, bound)
        return w, b

    def bn_affine(n):
        gamma = 1.0 + 0.1 * jax.random.normal(next(kit), (1, n), jnp.float32)
        beta = 0.1 * jax.random.normal(next(kit), (1, n), jnp.float32)
        mean = 0.1 * jax.random.normal(next(kit), (1, n), jnp.float32)
        var = jax.random.uniform(next(kit), (1, n), jnp.float32, 0.5, 1.5)
        scale = gamma / jnp.sqrt(var + eps)
        shift = beta - mean * scale
        return scale, shift

    h = list(hidden_dims)
    s0, t0 = bn_affine(input_dim)                                    # input_bn
    w1, b1 = linear(input_dim, h[0])                                 # layers[0]
    w2, b2 = linear(h[0], h[1]); s2, t2 = bn_affine(h[1])            # layers[1]
    w3, b3 = linear(h[1], h[2]); s3, t3 = bn_affine(h[2])            # layers[2]
    w4, b4 = linear(h[2], h[3]); s4, t4 = bn_affine(h[3])            # layers[3]
    w5, b5 = linear(h[3], h[3] // 2); s5, t5 = bn_affine(h[3] // 2)  # output[0..2]
    w6, b6 = linear(h[3] // 2, num_classes)                          # output[4]

    return (s0, t0, w1, b1, w2, b2, s2, t2, w3, b3, s3, t3,
            w4, b4, s4, t4, w5, b5, s5, t5, w6, b6)


def prepare_params(raw_params, *, num_classes=10, lane=128):
    """Fold every eval-mode BN affine into the FOLLOWING Linear
    (W' = diag(s) W, b' = t @ W + b) — exact for this module's
    Linear -> ReLU -> BN -> Dropout ordering — cast weights to bf16 (biases
    stay f32), and zero-pad the 64-wide layer-5 output and 10-wide head to
    128 lanes so every MXU operand / output store is lane-dense."""
    (s0, t0, w1, b1, w2, b2, s2, t2, w3, b3, s3, t3,
     w4, b4, s4, t4, w5, b5, s5, t5, w6, b6) = raw_params

    def fold(scale, shift, w, b):
        # (y*scale + shift) @ w + b  ==  y @ (scale^T * w) + (shift @ w + b)
        return w * scale.reshape(-1, 1), shift @ w + b

    w1f, b1f = fold(s0, t0, w1, b1)
    w3f, b3f = fold(s2, t2, w3, b3)
    w4f, b4f = fold(s3, t3, w4, b4)
    w5f, b5f = fold(s4, t4, w5, b5)
    w6f, b6f = fold(s5, t5, w6, b6)

    # Lane-pad the narrow tail with zeros: h5 width 64 -> 128, head width 10 -> 128.
    pad5 = lane - w5f.shape[1]
    padc = lane - num_classes
    w5p = jnp.pad(w5f, ((0, 0), (0, pad5)))
    b5p = jnp.pad(b5f, ((0, 0), (0, pad5)))
    w6p = jnp.pad(w6f, ((0, pad5), (0, padc)))
    b6p = jnp.pad(b6f, ((0, 0), (0, padc)))

    def cvt(w, b):
        return w.astype(jnp.bfloat16), b.astype(jnp.float32)

    return (*cvt(w1f, b1f), *cvt(w2, b2), *cvt(w3f, b3f),
            *cvt(w4f, b4f), *cvt(w5p, b5p), *cvt(w6p, b6p))


# ---------------------------------------------------------------------------
# References
# ---------------------------------------------------------------------------
def reference_forward_folded(x, prepared_params, *, num_classes=10):
    """Same folded/bf16 math path as the kernel (validates the Pallas lowering)."""
    (w1, b1, w2, b2, w3, b3, w4, b4, w5, b5, w6, b6) = prepared_params
    f32, bf16 = jnp.float32, jnp.bfloat16
    h = x.reshape(x.shape[0], -1).astype(bf16)
    for w, b in ((w1, b1), (w2, b2), (w3, b3), (w4, b4), (w5, b5)):
        h = jnp.maximum(jnp.dot(h, w, preferred_element_type=f32) + b, 0.0).astype(bf16)
    out = jnp.dot(h, w6, preferred_element_type=f32) + b6
    return out[:, :num_classes]


def reference_forward_exact(x, raw_params):
    """Unfolded f32 eval-mode forward, exactly mirroring the PyTorch module
    (validates the BN-folding direction and bf16 precision)."""
    (s0, t0, w1, b1, w2, b2, s2, t2, w3, b3, s3, t3,
     w4, b4, s4, t4, w5, b5, s5, t5, w6, b6) = raw_params
    h = x.reshape(x.shape[0], -1).astype(jnp.float32)
    h = h * s0 + t0                                    # input_bn (eval); dropout = id
    h = jnp.maximum(h @ w1 + b1, 0.0)                  # relu(layers[0](x))
    for w, b, s, t in ((w2, b2, s2, t2), (w3, b3, s3, t3),
                       (w4, b4, s4, t4), (w5, b5, s5, t5)):
        h = jnp.maximum(h @ w + b, 0.0)                # Linear -> ReLU
        h = h * s + t                                  # BatchNorm1d (eval); dropout = id
    return h @ w6 + b6                                 # head Linear(64 -> 10)


if __name__ == "__main__":
    key = jax.random.PRNGKey(0)
    k_params, k_x = jax.random.split(key)

    raw = init_params(k_params)
    params = prepare_params(raw)

    # batch=32 images of (1, 28, 28) -> flattened to 784, matching the module's view().
    # B=32 also exercises the 2-step grid (both v7x TensorCores) and tile padding paths.
    x = jax.random.normal(k_x, (32, 1, 28, 28), jnp.float32)

    out = complex_nn_forward(x, params)
    out = jax.block_until_ready(out)
    assert out.shape == (32, 10)

    ref_folded = reference_forward_folded(x, params)
    ref_exact = reference_forward_exact(x, raw)

    assert jnp.allclose(out, ref_folded, atol=2e-2, rtol=2e-2), \
        f"folded-path max abs err {jnp.max(jnp.abs(out - ref_folded))}"
    assert jnp.allclose(out, ref_exact, atol=6e-2, rtol=6e-2), \
        f"exact-f32 max abs err {jnp.max(jnp.abs(out - ref_exact))}"

    print("KERNEL_OK")
</pallas_src>

<mosaic_0001>
module attributes {stable_mosaic.version = 11 : i64} {
  func.func @mlp_kernel(%arg0: i32, %arg1: memref<16x784xbf16, #tpu.memory_space<vmem>>, %arg2: memref<784x512xbf16, #tpu.memory_space<vmem>>, %arg3: memref<1x512xf32, #tpu.memory_space<vmem>>, %arg4: memref<512x384xbf16, #tpu.memory_space<vmem>>, %arg5: memref<1x384xf32, #tpu.memory_space<vmem>>, %arg6: memref<384x256xbf16, #tpu.memory_space<vmem>>, %arg7: memref<1x256xf32, #tpu.memory_space<vmem>>, %arg8: memref<256x128xbf16, #tpu.memory_space<vmem>>, %arg9: memref<1x128xf32, #tpu.memory_space<vmem>>, %arg10: memref<128x128xbf16, #tpu.memory_space<vmem>>, %arg11: memref<1x128xf32, #tpu.memory_space<vmem>>, %arg12: memref<128x128xbf16, #tpu.memory_space<vmem>>, %arg13: memref<1x128xf32, #tpu.memory_space<vmem>>, %arg14: memref<16x128xbf16, #tpu.memory_space<vmem>>) attributes {dimension_semantics = [#tpu.dimension_semantics<parallel>], iteration_bounds = array<i64: 2>, scalar_prefetch = 0 : i64, scratch_operands = 0 : i64, tpu.core_type = #tpu.core_type<tc>, window_params = [{transform_indices = @transform_0, window_bounds = array<i64: 16, 784>}, {pipeline_mode = #tpu.pipeline_mode<synchronous>, transform_indices = @transform_1, window_bounds = array<i64: 784, 512>}, {pipeline_mode = #tpu.pipeline_mode<synchronous>, transform_indices = @transform_2, window_bounds = array<i64: 1, 512>}, {pipeline_mode = #tpu.pipeline_mode<synchronous>, transform_indices = @transform_3, window_bounds = array<i64: 512, 384>}, {pipeline_mode = #tpu.pipeline_mode<synchronous>, transform_indices = @transform_4, window_bounds = array<i64: 1, 384>}, {pipeline_mode = #tpu.pipeline_mode<synchronous>, transform_indices = @transform_5, window_bounds = array<i64: 384, 256>}, {pipeline_mode = #tpu.pipeline_mode<synchronous>, transform_indices = @transform_6, window_bounds = array<i64: 1, 256>}, {pipeline_mode = #tpu.pipeline_mode<synchronous>, transform_indices = @transform_7, window_bounds = array<i64: 256, 128>}, {pipeline_mode = #tpu.pipeline_mode<synchronous>, transform_indices = @transform_8, window_bounds = array<i64: 1, 128>}, {pipeline_mode = #tpu.pipeline_mode<synchronous>, transform_indices = @transform_9, window_bounds = array<i64: 128, 128>}, {pipeline_mode = #tpu.pipeline_mode<synchronous>, transform_indices = @transform_10, window_bounds = array<i64: 1, 128>}, {pipeline_mode = #tpu.pipeline_mode<synchronous>, transform_indices = @transform_11, window_bounds = array<i64: 128, 128>}, {pipeline_mode = #tpu.pipeline_mode<synchronous>, transform_indices = @transform_12, window_bounds = array<i64: 1, 128>}, {transform_indices = @transform_13, window_bounds = array<i64: 16, 128>}]} {
    %c0 = arith.constant 0 : index
    %c0_0 = arith.constant 0 : index
    %0 = vector.load %arg1[%c0, %c0_0] : memref<16x784xbf16, #tpu.memory_space<vmem>>, vector<16x784xbf16>
    %c0_1 = arith.constant 0 : index
    %c0_2 = arith.constant 0 : index
    %1 = vector.load %arg2[%c0_1, %c0_2] : memref<784x512xbf16, #tpu.memory_space<vmem>>, vector<784x512xbf16>
    %cst = arith.constant dense<0.000000e+00> : vector<16x512xf32>
    %2 = tpu.matmul %0, %1, %cst {dimension_numbers = #tpu.dot_dimension_numbers<[1], [0], [0], [1], [0, 0, 1, 1], [], []>} : vector<16x784xbf16>, vector<784x512xbf16>, vector<16x512xf32> -> vector<16x512xf32>
    %c0_3 = arith.constant 0 : index
    %c0_4 = arith.constant 0 : index
    %3 = vector.load %arg3[%c0_3, %c0_4] : memref<1x512xf32, #tpu.memory_space<vmem>>, vector<1x512xf32>
    %4 = vector.broadcast %3 : vector<1x512xf32> to vector<16x512xf32>
    %5 = arith.addf %2, %4 : vector<16x512xf32>
    %cst_5 = arith.constant 0.000000e+00 : f32
    %6 = vector.broadcast %cst_5 : f32 to vector<16x512xf32>
    %7 = arith.maximumf %5, %6 : vector<16x512xf32>
    %8 = arith.truncf %7 : vector<16x512xf32> to vector<16x512xbf16>
    %c0_6 = arith.constant 0 : index
    %c0_7 = arith.constant 0 : index
    %9 = vector.load %arg4[%c0_6, %c0_7] : memref<512x384xbf16, #tpu.memory_space<vmem>>, vector<512x384xbf16>
    %cst_8 = arith.constant dense<0.000000e+00> : vector<16x384xf32>
    %10 = tpu.matmul %8, %9, %cst_8 {dimension_numbers = #tpu.dot_dimension_numbers<[1], [0], [0], [1], [0, 0, 1, 1], [], []>} : vector<16x512xbf16>, vector<512x384xbf16>, vector<16x384xf32> -> vector<16x384xf32>
    %c0_9 = arith.constant 0 : index
    %c0_10 = arith.constant 0 : index
    %11 = vector.load %arg5[%c0_9, %c0_10] : memref<1x384xf32, #tpu.memory_space<vmem>>, vector<1x384xf32>
    %12 = vector.broadcast %11 : vector<1x384xf32> to vector<16x384xf32>
    %13 = arith.addf %10, %12 : vector<16x384xf32>
    %cst_11 = arith.constant 0.000000e+00 : f32
    %14 = vector.broadcast %cst_11 : f32 to vector<16x384xf32>
    %15 = arith.maximumf %13, %14 : vector<16x384xf32>
    %16 = arith.truncf %15 : vector<16x384xf32> to vector<16x384xbf16>
    %c0_12 = arith.constant 0 : index
    %c0_13 = arith.constant 0 : index
    %17 = vector.load %arg6[%c0_12, %c0_13] : memref<384x256xbf16, #tpu.memory_space<vmem>>, vector<384x256xbf16>
    %cst_14 = arith.constant dense<0.000000e+00> : vector<16x256xf32>
    %18 = tpu.matmul %16, %17, %cst_14 {dimension_numbers = #tpu.dot_dimension_numbers<[1], [0], [0], [1], [0, 0, 1, 1], [], []>} : vector<16x384xbf16>, vector<384x256xbf16>, vector<16x256xf32> -> vector<16x256xf32>
    %c0_15 = arith.constant 0 : index
    %c0_16 = arith.constant 0 : index
    %19 = vector.load %arg7[%c0_15, %c0_16] : memref<1x256xf32, #tpu.memory_space<vmem>>, vector<1x256xf32>
    %20 = vector.broadcast %19 : vector<1x256xf32> to vector<16x256xf32>
    %21 = arith.addf %18, %20 : vector<16x256xf32>
    %cst_17 = arith.constant 0.000000e+00 : f32
    %22 = vector.broadcast %cst_17 : f32 to vector<16x256xf32>
    %23 = arith.maximumf %21, %22 : vector<16x256xf32>
    %24 = arith.truncf %23 : vector<16x256xf32> to vector<16x256xbf16>
    %c0_18 = arith.constant 0 : index
    %c0_19 = arith.constant 0 : index
    %25 = vector.load %arg8[%c0_18, %c0_19] : memref<256x128xbf16, #tpu.memory_space<vmem>>, vector<256x128xbf16>
    %cst_20 = arith.constant dense<0.000000e+00> : vector<16x128xf32>
    %26 = tpu.matmul %24, %25, %cst_20 {dimension_numbers = #tpu.dot_dimension_numbers<[1], [0], [0], [1], [0, 0, 1, 1], [], []>} : vector<16x256xbf16>, vector<256x128xbf16>, vector<16x128xf32> -> vector<16x128xf32>
    %c0_21 = arith.constant 0 : index
    %c0_22 = arith.constant 0 : index
    %27 = vector.load %arg9[%c0_21, %c0_22] : memref<1x128xf32, #tpu.memory_space<vmem>>, vector<1x128xf32>
    %28 = vector.broadcast %27 : vector<1x128xf32> to vector<16x128xf32>
    %29 = arith.addf %26, %28 : vector<16x128xf32>
    %cst_23 = arith.constant 0.000000e+00 : f32
    %30 = vector.broadcast %cst_23 : f32 to vector<16x128xf32>
    %31 = arith.maximumf %29, %30 : vector<16x128xf32>
    %32 = arith.truncf %31 : vector<16x128xf32> to vector<16x128xbf16>
    %c0_24 = arith.constant 0 : index
    %c0_25 = arith.constant 0 : index
    %33 = vector.load %arg10[%c0_24, %c0_25] : memref<128x128xbf16, #tpu.memory_space<vmem>>, vector<128x128xbf16>
    %cst_26 = arith.constant dense<0.000000e+00> : vector<16x128xf32>
    %34 = tpu.matmul %32, %33, %cst_26 {dimension_numbers = #tpu.dot_dimension_numbers<[1], [0], [0], [1], [0, 0, 1, 1], [], []>} : vector<16x128xbf16>, vector<128x128xbf16>, vector<16x128xf32> -> vector<16x128xf32>
    %c0_27 = arith.constant 0 : index
    %c0_28 = arith.constant 0 : index
    %35 = vector.load %arg11[%c0_27, %c0_28] : memref<1x128xf32, #tpu.memory_space<vmem>>, vector<1x128xf32>
    %36 = vector.broadcast %35 : vector<1x128xf32> to vector<16x128xf32>
    %37 = arith.addf %34, %36 : vector<16x128xf32>
    %cst_29 = arith.constant 0.000000e+00 : f32
    %38 = vector.broadcast %cst_29 : f32 to vector<16x128xf32>
    %39 = arith.maximumf %37, %38 : vector<16x128xf32>
    %40 = arith.truncf %39 : vector<16x128xf32> to vector<16x128xbf16>
    %c0_30 = arith.constant 0 : index
    %c0_31 = arith.constant 0 : index
    %41 = vector.load %arg12[%c0_30, %c0_31] : memref<128x128xbf16, #tpu.memory_space<vmem>>, vector<128x128xbf16>
    %cst_32 = arith.constant dense<0.000000e+00> : vector<16x128xf32>
    %42 = tpu.matmul %40, %41, %cst_32 {dimension_numbers = #tpu.dot_dimension_numbers<[1], [0], [0], [1], [0, 0, 1, 1], [], []>} : vector<16x128xbf16>, vector<128x128xbf16>, vector<16x128xf32> -> vector<16x128xf32>
    %c0_33 = arith.constant 0 : index
    %c0_34 = arith.constant 0 : index
    %43 = vector.load %arg13[%c0_33, %c0_34] : memref<1x128xf32, #tpu.memory_space<vmem>>, vector<1x128xf32>
    %44 = vector.broadcast %43 : vector<1x128xf32> to vector<16x128xf32>
    %45 = arith.addf %42, %44 : vector<16x128xf32>
    %46 = arith.truncf %45 : vector<16x128xf32> to vector<16x128xbf16>
    %c0_35 = arith.constant 0 : index
    %c0_36 = arith.constant 0 : index
    %47 = vector.load %arg14[%c0_35, %c0_36] : memref<16x128xbf16, #tpu.memory_space<vmem>>, vector<16x128xbf16>
    tpu.vector_store %arg14[%c0_35, %c0_36], %46 {strides = array<i32>} : memref<16x128xbf16, #tpu.memory_space<vmem>>, vector<16x128xbf16>,
    return
  }
  func.func @transform_0(%arg0: i32) -> (i32, i32) {
    %c0_i32 = arith.constant 0 : i32
    %c0_i32_0 = arith.constant 0 : i32
    return %arg0, %c0_i32 : i32, i32
  }
  func.func @transform_1(%arg0: i32) -> (i32, i32) {
    %c0_i32 = arith.constant 0 : i32
    %c0_i32_0 = arith.constant 0 : i32
    %c0_i32_1 = arith.constant 0 : i32
    return %c0_i32, %c0_i32_0 : i32, i32
  }
  func.func @transform_2(%arg0: i32) -> (i32, i32) {
    %c0_i32 = arith.constant 0 : i32
    %c0_i32_0 = arith.constant 0 : i32
    %c0_i32_1 = arith.constant 0 : i32
    return %c0_i32, %c0_i32_0 : i32, i32
  }
  func.func @transform_3(%arg0: i32) -> (i32, i32) {
    %c0_i32 = arith.constant 0 : i32
    %c0_i32_0 = arith.constant 0 : i32
    %c0_i32_1 = arith.constant 0 : i32
    return %c0_i32, %c0_i32_0 : i32, i32
  }
  func.func @transform_4(%arg0: i32) -> (i32, i32) {
    %c0_i32 = arith.constant 0 : i32
    %c0_i32_0 = arith.constant 0 : i32
    %c0_i32_1 = arith.constant 0 : i32
    return %c0_i32, %c0_i32_0 : i32, i32
  }
  func.func @transform_5(%arg0: i32) -> (i32, i32) {
    %c0_i32 = arith.constant 0 : i32
    %c0_i32_0 = arith.constant 0 : i32
    %c0_i32_1 = arith.constant 0 : i32
    return %c0_i32, %c0_i32_0 : i32, i32
  }
  func.func @transform_6(%arg0: i32) -> (i32, i32) {
    %c0_i32 = arith.constant 0 : i32
    %c0_i32_0 = arith.constant 0 : i32
    %c0_i32_1 = arith.constant 0 : i32
    return %c0_i32, %c0_i32_0 : i32, i32
  }
  func.func @transform_7(%arg0: i32) -> (i32, i32) {
    %c0_i32 = arith.constant 0 : i32
    %c0_i32_0 = arith.constant 0 : i32
    %c0_i32_1 = arith.constant 0 : i32
    return %c0_i32, %c0_i32_0 : i32, i32
  }
  func.func @transform_8(%arg0: i32) -> (i32, i32) {
    %c0_i32 = arith.constant 0 : i32
    %c0_i32_0 = arith.constant 0 : i32
    %c0_i32_1 = arith.constant 0 : i32
    return %c0_i32, %c0_i32_0 : i32, i32
  }
  func.func @transform_9(%arg0: i32) -> (i32, i32) {
    %c0_i32 = arith.constant 0 : i32
    %c0_i32_0 = arith.constant 0 : i32
    %c0_i32_1 = arith.constant 0 : i32
    return %c0_i32, %c0_i32_0 : i32, i32
  }
  func.func @transform_10(%arg0: i32) -> (i32, i32) {
    %c0_i32 = arith.constant 0 : i32
    %c0_i32_0 = arith.constant 0 : i32
    %c0_i32_1 = arith.constant 0 : i32
    return %c0_i32, %c0_i32_0 : i32, i32
  }
  func.func @transform_11(%arg0: i32) -> (i32, i32) {
    %c0_i32 = arith.constant 0 : i32
    %c0_i32_0 = arith.constant 0 : i32
    %c0_i32_1 = arith.constant 0 : i32
    return %c0_i32, %c0_i32_0 : i32, i32
  }
  func.func @transform_12(%arg0: i32) -> (i32, i32) {
    %c0_i32 = arith.constant 0 : i32
    %c0_i32_0 = arith.constant 0 : i32
    %c0_i32_1 = arith.constant 0 : i32
    return %c0_i32, %c0_i32_0 : i32, i32
  }
  func.func @transform_13(%arg0: i32) -> (i32, i32) {
    %c0_i32 = arith.constant 0 : i32
    %c0_i32_0 = arith.constant 0 : i32
    return %arg0, %c0_i32 : i32, i32
  }
}

</mosaic_0001>

<bundles_post_ra>
// kernel: tpu_custom_call.1
= control target key start
LH: loop header
LB: loop body
LE: loop exit
PB: predicated region body
PF: predicated region fallthrough
CT: control target
= control target key end

     0   :  { %s5914_s0 = inlined_call_operand.hbm [shape: bf16[32,784], index: 0, kind: input, shape index: {}]   ;;  %s5915_s1 = inlined_call_operand.hbm [shape: bf16[784,512], index: 1, kind: input, shape index: {}]   ;;  %s5916_s2 = inlined_call_operand.hbm [shape: f32[1,512], index: 2, kind: input, shape index: {}]   ;;  %s5917_s3 = inlined_call_operand.hbm [shape: bf16[512,384], index: 3, kind: input, shape index: {}]   ;;  %s5918_s4 = inlined_call_operand.vmem [shape: f32[1,384], index: 4, kind: input, shape index: {}]   ;;  %s5919_s5 = inlined_call_operand.hbm [shape: bf16[384,256], index: 5, kind: input, shape index: {}]   ;;  %s5920_s6 = inlined_call_operand.vmem [shape: f32[1,256], index: 6, kind: input, shape index: {}]   ;;  %s5921_s7 = inlined_call_operand.hbm [shape: bf16[256,128], index: 7, kind: input, shape index: {}]   ;;  %s5922_s8 = inlined_call_operand.vmem [shape: f32[1,128], index: 8, kind: input, shape index: {}]   ;;  %s5923_s9 = inlined_call_operand.hbm [shape: bf16[128,128], index: 9, kind: input, shape index: {}]   ;;  %s5924_s10 = inlined_call_operand.vmem [shape: f32[1,128], index: 10, kind: input, shape index: {}]   ;;  %s5925_s11 = inlined_call_operand.hbm [shape: bf16[128,128], index: 11, kind: input, shape index: {}]   ;;  %s5926_s12 = inlined_call_operand.vmem [shape: f32[1,128], index: 12, kind: input, shape index: {}]   ;;  %s5927_s13 = inlined_call_operand.hbm [shape: bf16[32,128], index: 13, kind: output, shape index: {}]  }
   0x1   :  { %5937 = sst [smem:[#allocation23_spill]] %s5915_s1 }
   0x2   :  { %5938 = sst [smem:[#allocation24_spill]] %s5916_s2 }
   0x3   :  { %5939 = sst [smem:[#allocation25_spill]] %s5917_s3 }
   0x4   :  { %5940 = sst [smem:[#allocation26_spill]] %s5919_s5 }
   0x5   :  { %5941 = sst [smem:[#allocation27_spill]] %s5921_s7 }
   0x6   :  { %5942 = sst [smem:[#allocation28_spill]] %s5923_s9 }
   0x7   :  { %5943 = sst [smem:[#allocation29_spill]] %s5927_s13 }
   0x8   :  { %18 = vsyncpa [#allocation3], 0 }
   0x9   :  { %20 = vsyncpa [#allocation3 + $0x1], 0 }
   0xa   :  { %21 = vsyncpa [#allocation6], 0 }
   0xb   :  { %22 = vsyncpa [#allocation9], 0 }
   0xc   :  { %23 = vsyncpa [#allocation12], 0 }
   0xd   :  { %24 = vsyncpa [#allocation15], 0 }
   0xe   :  { %25 = vsyncpa [#allocation4], 0 }
   0xf   :  { %27 = vsyncpa [#allocation4 + $0x1], 0  ;;  %s5564_s25 = smov 0   ;;  %s5566_s26 = smov 0  }
  0x10   :  { %s5568_s27 = smov 0   ;;  %s5570_s28 = smov 0  }
  0x11 LB: > { %s5470_s29 = smov [#allocation5]   ;;  %s5585_s14 = sadd.s32 4294967295, %s5468_s28   ;;  %s5468_s28 = sphi %s5570_s28, %s5977_s28   ;;  %s5464_s27 = sphi %s5568_s27, %s5976_s27   ;;  %s5460_s26 = sphi %s5566_s26, %s5975_s26   ;;  %s5456_s25 = sphi %s5564_s25, %s5974_s25  }
  0x12   : > { %s354_s30 = sshll.u32 %s5470_s29, 4  ;;  %p3961_p0 = scmp.ge.s32.totalorder %s5468_s28, 1  ;;  %s355_s30 = int_to_ptr.vmem [resolvable:$true] %s354_s30 }
  0x13   : > { %p5929_p1 = scmp.eq.s32.totalorder %s5585_s14, 0  ;;  %p342_p2 = scmp.lt.s32.totalorder %s5468_s28, 3 }
  0x14   : > { %s5471_s16 = smov [#allocation8]   ;;  %s5472_s19 = smov [#allocation11]  }
  0x15   : > { %p5590_p3 = pnand %p3961_p0, %p342_p2  ;;  %s378_s17 = sshll.u32 %s5471_s16, 4  ;;  %s5603_s17 = int_to_ptr.vmem [resolvable:$true] %s378_s17 }
  0x16   : > { %s5605_s20 = sshll.u32 %s5472_s19, 4  ;;  %s5189_s22 = scalar_lea.vmem %s355_s30, 25088  ;;  %s411_s20 = int_to_ptr.vmem [resolvable:$true] %s5605_s20 }
  0x17   : > { %s5944_s15 = scalar_select %p5590_p3, 1, 0 }
  0x18   : > { %p4540_p5 = pneg %p5590_p3  ;;  %p5190_p8 = scmp.ne.s32.totalorder %s355_s30, %s5189_s22 }
  0x19   : > { %p5197_p11 = scmp.lt.s32.totalorder %s355_s30, %s355_s30  ;;  %p5198_p12 = scmp.lt.s32.totalorder %s5189_s22, %s5189_s22 }
  0x1a   : > { %p5599_p6 = pnand %p4540_p5, %p5929_p1 }
  0x1b   : > { %p5199_p13 = por %p5198_p12, %p5197_p11 }
  0x1c   : > { %p5609_p7 = pneg %p5599_p6 }
  0x1e   : > { %p5192_p9 = pnand %p5190_p8, %p5609_p7 }
  0x20   : > { %p5193_p10 = pneg %p5192_p9 }
  0x22   : > { %p5200_p0 = pnand %p5199_p13, %p5193_p10 }
  0x24   : > { %5203 = shalt.err (!%p5200_p0)
}
  0x25   : > { %s5473_s23 = smov 256   ;;  %s5474_s24 = smov 16  }
  0x26   : > { %s5947_s1 = sld [smem:[#allocation23_spill]]  ;;  %s5215_s19 = scalar_lea.vmem %s5603_s17, 12288 }
  0x27   : > { %p5216_p2 = scmp.ne.s32.totalorder %s5603_s17, %s5215_s19  ;;  %p5223_p9 = scmp.lt.s32.totalorder %s5603_s17, %s5603_s17 }
  0x28   : > { %p5224_p10 = scmp.lt.s32.totalorder %s5215_s19, %s5215_s19 }
  0x29   : > { %p5218_p5 = pnand %p5216_p2, %p5609_p7 }
  0x2a   : > { %p5225_p11 = por %p5224_p10, %p5223_p9 }
  0x2b   : > { %p5219_p8 = pneg %p5218_p5 }
  0x2c   : > { %4543 = dma.hbm_to_vmem [thread:$0]  (!%p5599_p6), %s5947_s1, 25088, %s355_s30, [#allocation6], %s5473_s23, %s5473_s23, %s5474_s24  }
  0x2d   : > { %p5226_p12 = pnand %p5225_p11, %p5219_p8 }
  0x2f   : > { %5229 = shalt.err (!%p5226_p12)
}
  0x30   : > { %s5475_s22 = smov 192   ;;  %s5476_s13 = smov 12  }
  0x31   : > { %s5948_s3 = sld [smem:[#allocation25_spill]]  ;;  %s5241_s23 = scalar_lea.vmem %s411_s20, 2048 }
  0x32   : > { %p5242_p13 = scmp.ne.s32.totalorder %s411_s20, %s5241_s23  ;;  %p5249_p5 = scmp.lt.s32.totalorder %s411_s20, %s411_s20 }
  0x33   : > { %p5250_p8 = scmp.lt.s32.totalorder %s5241_s23, %s5241_s23 }
  0x34   : > { %p5244_p0 = pnand %p5242_p13, %p5609_p7 }
  0x35   : > { %p5251_p9 = por %p5250_p8, %p5249_p5 }
  0x36   : > { %p5245_p2 = pneg %p5244_p0 }
  0x37   : > { %4549 = dma.hbm_to_vmem [thread:$0]  (!%p5599_p6), %s5948_s3, 12288, %s5603_s17, [#allocation9], %s5475_s22, %s5475_s22, %s5476_s13  }
  0x38   : > { %p5252_p10 = pnand %p5251_p9, %p5245_p2 }
  0x3a   : > { %5255 = shalt.err (!%p5252_p10)
}
  0x3b   : > { %s5931_s24 = smov 64   ;;  %s5933_s16 = smov 4  }
  0x3c   : > { %s5949_s7 = sld [smem:[#allocation27_spill]]  ;;  %s5479_s19 = smov [#allocation7]  }
  0x3d   : > { %s368_s22 = sshll.u32 %s5479_s19, 4  ;;  %s5480_s29 = smov [#allocation10]   ;;  %s369_s22 = int_to_ptr.vmem [resolvable:$true] %s368_s22 }
  0x3e   : > { %s394_s30 = sshll.u32 %s5480_s29, 4  ;;  %s5267_s23 = scalar_lea.vmem %s369_s22, 64  ;;  %s395_s30 = int_to_ptr.vmem [resolvable:$true] %s394_s30 }
  0x3f   : > { %p5268_p11 = scmp.ne.s32.totalorder %s369_s22, %s5267_s23  ;;  %p5275_p0 = scmp.lt.s32.totalorder %s369_s22, %s369_s22 }
  0x40   : > { %p5276_p2 = scmp.lt.s32.totalorder %s5267_s23, %s5267_s23 }
  0x41   : > { %p5270_p12 = pnand %p5268_p11, %p5609_p7 }
  0x42   : > { %4555 = dma.hbm_to_vmem [thread:$0]  (!%p5599_p6), %s5949_s7, 2048, %s411_s20, [#allocation12], %s5931_s24, %s5931_s24, %s5933_s16  }
  0x43   : > { %p5271_p13 = pneg %p5270_p12  ;;  %p5277_p5 = por %p5276_p2, %p5275_p0 }
  0x45   : > { %p5278_p8 = pnand %p5277_p5, %p5271_p13 }
  0x47   : > { %5281 = shalt.err (!%p5278_p8)
}
  0x48   : > { %s5950_s2 = sld [smem:[#allocation24_spill]]  ;;  %s5293_s20 = scalar_lea.vmem %s395_s30, 6144 }
  0x49   : > { %p5294_p9 = scmp.ne.s32.totalorder %s395_s30, %s5293_s20  ;;  %p5301_p11 = scmp.lt.s32.totalorder %s395_s30, %s395_s30 }
  0x4a   : > { %p5302_p12 = scmp.lt.s32.totalorder %s5293_s20, %s5293_s20 }
  0x4b   : > { %p5296_p10 = pnand %p5294_p9, %p5609_p7 }
  0x4c   : > { %p5303_p1 = por %p5302_p12, %p5301_p11 }
  0x4d   : > { %p5297_p4 = pneg %p5296_p10 }
  0x4e   : > { %4546 = dma.hbm_to_vmem [thread:$0]  (!%p5599_p6), %s5950_s2, 64, %s369_s22, [#allocation6]  }
  0x4f   : > { %p5304_p3 = pnand %p5303_p1, %p5297_p4 }
  0x51   : > { %5307 = shalt.err (!%p5304_p3)
}
  0x52   : > { %s5481_s17 = smov 128   ;;  %s5482_s19 = smov 8  }
  0x53   : > { %s5951_s5 = sld [smem:[#allocation26_spill]]  ;;  %s5483_s22 = smov [#allocation13]  }
  0x54   : > { %s426_s23 = sshll.u32 %s5483_s22, 4  ;;  %s5484_s13 = smov [#allocation14]   ;;  %s427_s23 = int_to_ptr.vmem [resolvable:$true] %s426_s23 }
  0x55   : > { %s442_s24 = sshll.u32 %s5484_s13, 4  ;;  %s5319_s16 = scalar_lea.vmem %s427_s23, 1024  ;;  %s443_s24 = int_to_ptr.vmem [resolvable:$true] %s442_s24 }
  0x56   : > { %p5320_p13 = scmp.ne.s32.totalorder %s427_s23, %s5319_s16  ;;  %p5327_p3 = scmp.lt.s32.totalorder %s427_s23, %s427_s23 }
  0x57   : > { %p5328_p4 = scmp.lt.s32.totalorder %s5319_s16, %s5319_s16 }
  0x58   : > { %p5322_p0 = pnand %p5320_p13, %p5609_p7 }
  0x59   : > { %4552 = dma.hbm_to_vmem [thread:$0]  (!%p5599_p6), %s5951_s5, 6144, %s395_s30, [#allocation9], %s5481_s17, %s5481_s17, %s5482_s19  }
  0x5a   : > { %p5323_p1 = pneg %p5322_p0  ;;  %p5329_p2 = por %p5328_p4, %p5327_p3 }
  0x5c   : > { %p5330_p5 = pnand %p5329_p2, %p5323_p1 }
  0x5e   : > { %5333 = shalt.err (!%p5330_p5)
}
  0x5f   : > { %s5952_s20 = smov 4   ;;  %s5953_s29 = smov 64  }
  0x60   : > { %s5954_s9 = sld [smem:[#allocation28_spill]]  ;;  %s5345_s19 = scalar_lea.vmem %s443_s24, 1024 }
  0x61   : > { %p5346_p8 = scmp.ne.s32.totalorder %s443_s24, %s5345_s19  ;;  %p5353_p11 = scmp.lt.s32.totalorder %s443_s24, %s443_s24 }
  0x62   : > { %p5354_p12 = scmp.lt.s32.totalorder %s5345_s19, %s5345_s19 }
  0x63   : > { %p5348_p9 = pnand %p5346_p8, %p5609_p7 }
  0x64   : > { %p5355_p13 = por %p5354_p12, %p5353_p11 }
  0x65   : > { %p5349_p10 = pneg %p5348_p9 }
  0x66   : > { %4558 = dma.hbm_to_vmem [thread:$0]  (!%p5599_p6), %s5954_s9, 1024, %s427_s23, [#allocation12], %s5953_s29, %s5953_s29, %s5952_s20  }
  0x67   : > { %p5356_p0 = pnand %p5355_p13, %p5349_p10 }
  0x69   : > { %5359 = shalt.err (!%p5356_p0)
}
  0x6a   : > { %4561 = dma.hbm_to_vmem [thread:$0]  (!%p5599_p6), %s5925_s11, 1024, %s443_s24, [#allocation15], %s5953_s29, %s5953_s29, %s5952_s20  }
  0x6b   : > { %s3960_s18 = sadd.s32 4294967294, %s5468_s28   ;;  %s5679_s21 = sadd.s32 1, %s5468_s28  }
  0x6c   : > { %s40_s22 = sadd.s32 1, %s5464_s27  ;;  %s37_s23 = ssub.s32 %s5468_s28, %s5679_s21 }
  0x6d   : > { %p47_p7 = scmp.ne.s32.totalorder %s5464_s27, %s5460_s26  ;;  %p38_p1 = scmp.eq.s32.totalorder %s37_s23, 0 }
  0x6e   : > { %p48_p3 = scmp.eq.s32.totalorder %s5468_s28, 0  ;;  %p53_p4 = scmp.ne.s32.totalorder %s5460_s26, %s5456_s25 }
  0x6f   : > { %p329_p2 = scmp.eq.s32.totalorder %s5585_s14, 1  ;;  %p5955_p8 = scmp.eq.s32.totalorder %s5585_s14, 0 }
  0x70   : > { %s5691_s13 = scalar_select %p38_p1, %s5464_s27, %s40_s22  }
  0x71   : > { %p49_p5 = por %p48_p3, %p47_p7  ;;  %p5695_p9 = por %p5955_p8, %p53_p4 }
  0x72   : > { %p5699_p6 = por %p329_p2, %p47_p7  ;;  %p335_p10 = scmp.eq.s32.totalorder %s3960_s18, 1 }
  0x73   : > { %s5956_s30 = scalar_select %p5695_p9, 1, 0 }
  0x74   : > { %s5957_s24 = scalar_select %p5699_p6, 1, 0 }
  0x75   : > { %p4577_p11 = scmp.lt.s32.totalorder %s5468_s28, 2  ;;  %s459_s20 = sand.u32 1, %s5464_s27  }
  0x76   : > { %p5705_p12 = por %p335_p10, %p53_p4  ;;  %s4505_s17 = smul.u32 56, %s459_s20 }
  0x77   : > { %p5709_p13 = pnand %p4577_p11, %p49_p5  ;;  %s4506_s16 = smul.u32 896, %s5468_s28 }
  0x78   : > { %s5958_s29 = scalar_select %p5705_p12, 1, 0 }
  0x79   : > { %s5717_s23 = scalar_lea.hbm %s5914_s0, %s4506_s16  ;;  %s463_s18 = scalar_lea.vmem [#allocation2], %s4505_s17 }
  0x7a   : > { %s471_s2 = sshll.u32 %s463_s18, 4  ;;  %s5721_s3 = scalar_lea.sflag [#allocation3], %s459_s20  ;;  %s5719_s2 = int_to_ptr.vmem [resolvable:$true] %s471_s2 }
  0x7b   : > { %s5360_s5 = scalar_lea.hbm %s5717_s23, 896  ;;  %p5362_p7 = pneg %p5709_p13 }
  0x7c   : > { %p5361_p0 = scmp.ne.s32.totalorder %s5717_s23, %s5360_s5  ;;  %s5365_s16 = scalar_lea.hbm %s5914_s0, 1792 }
  0x7d   : > { %p5366_p4 = scmp.lt.s32.totalorder %s5717_s23, %s5914_s0  ;;  %p5367_p2 = scmp.lt.s32.totalorder %s5365_s16, %s5360_s5 }
  0x7e   : > { %p5363_p1 = pnand %p5362_p7, %p5361_p0 }
  0x7f   : > { %p5368_p5 = por %p5367_p2, %p5366_p4 }
  0x80   : > { %p5364_p3 = pneg %p5363_p1 }
  0x82   : > { %p5369_p8 = pnand %p5368_p5, %p5364_p3 }
  0x84   : > { %5372 = shalt.err (!%p5369_p8)
}
  0x85   : > { %s5373_s20 = scalar_lea.vmem %s5719_s2, 896  ;;  %s5485_s17 = smov [#allocation2]  }
  0x86   : > { %p5374_p10 = scmp.ne.s32.totalorder %s5719_s2, %s5373_s20  ;;  %s5378_s18 = sshll.u32 %s5485_s17, 4  ;;  %s5379_s18 = int_to_ptr.vmem [resolvable:$false] %s5378_s18 }
  0x87   : > { %s5380_s7 = scalar_lea.vmem %s5379_s18, 1792  ;;  %p5381_p1 = scmp.lt.s32.totalorder %s5719_s2, %s5379_s18 }
  0x88   : > { %p5376_p11 = pnand %p5374_p10, %p5362_p7  ;;  %p5382_p12 = scmp.lt.s32.totalorder %s5380_s7, %s5373_s20 }
  0x8a   : > { %p5377_p0 = pneg %p5376_p11  ;;  %p5383_p6 = por %p5382_p12, %p5381_p1 }
  0x8c   : > { %p5384_p9 = pnand %p5383_p6, %p5377_p0 }
  0x8e   : > { %5387 = shalt.err (!%p5384_p9)
}
  0x8f   : > { %s5486_s5 = smov 448   ;;  %s5487_s9 = smov 28  }
  0x90   : > { %4565 = dma.hbm_to_vmem [thread:$0]  (!%p5709_p13), %s5717_s23, 896, %s5719_s2, %s5721_s3, %s5486_s5, %s5486_s5, %s5487_s9  }
  0x91   : > { %p5960_p7 = scmp.ne.s32.totalorder %s5944_s15, 0 }
  0x92   : > { %s5745_s16 = sand.u32 (!%p5960_p7), 1, %s5460_s26   ;;  %p5961_p9 = scmp.ne.s32.totalorder (!%p5960_p7), %s5956_s30, 0 }
  0x93   : > { %483 = sbr.rel (%p5960_p7) target bundleno = 1646 (0x66e), region = 72  ;;  %s486_s22 = scalar_lea.sflag (!%p5960_p7), [#allocation3], %s5745_s16 }
  0x94   : > { %s4507_s1 = smul.u32 (!%p5960_p7), 56, %s5745_s16 }
  0x96   : > { %s5749_s20 = scalar_lea.vmem (!%p5960_p7), [#allocation2], %s4507_s1 }
  0x98   : > { %5431 = dma.done.wait (%p5961_p9), %s486_s22, 896  }
  0x99   : > { %5433 = vsyncadd (%p5961_p9), %s486_s22, 4294966400  ;;  %p5962_p6 = scmp.eq.s32.totalorder %s5585_s14, 0 }
  0x9b   : > { %5435 = dma.done.wait (%p5962_p6), [#allocation6], 25152   ;;  %p5963_p12 = pmov %p5962_p6 }
  0x9c   : > { %p5964_p13 = pmov %p5962_p6 }
  0x9d   : > { %5437 = vsyncadd (%p5963_p12), [#allocation6], 4294942144 }
  0x9e   : > { %5439 = dma.done.wait (%p5964_p13), [#allocation9], 18432   ;;  %p5965_p3 = pmov %p5962_p6 }
  0xa0   : > { %5441 = vsyncadd (%p5965_p3), [#allocation9], 4294948864  ;;  %p5966_p4 = pmov %p5965_p3 }
  0xa1   : > { %p5967_p2 = pmov %p5965_p3 }
  0xa2   : > { %5443 = dma.done.wait (%p5966_p4), [#allocation12], 3072  }
  0xa3   : > { %5445 = vsyncadd (%p5967_p2), [#allocation12], 4294964224  ;;  %p5968_p5 = pmov %p5967_p2 }
  0xa4   : > { %p5969_p8 = pmov %p5967_p2 }
  0xa5   : > { %5447 = dma.done.wait (%p5968_p5), [#allocation15], 1024  }
  0xa6   : > { %5449 = vsyncadd (%p5969_p8), [#allocation15], 4294966272  ;;  %v4640_v0 = vld [vmem:[#allocation5 + $0xe4] ss:$16 sps:$4 sm:$0xff]   ;;  %v4644_v2 = vld [vmem:[#allocation5 + $0xe0] ss:$16 sps:$4 sm:$0xff]  }
  0xa7   : > { %v4642_v1 = vld [vmem:[#allocation5 + $0x2e4] ss:$16 sps:$4 sm:$0xff]   ;;  %1808 = vmatprep.subr.bf16.mxu0 %v4640_v0  ;;  %v4645_v3 = vld [vmem:[#allocation5 + $0x2e0] ss:$16 sps:$4 sm:$0xff]   ;;  %vm1804_vm0 = vcmask 130048   ;;  %vm5490_vm1 = vmmov 0  }
  0xa8   : > { %1851 = vmatprep.subr.bf16.mxu1 %v4642_v1  ;;  %v4646_v4 = vld [vmem:[#allocation5 + $0xc4] ss:$16 sps:$4 sm:$0xff]   ;;  %1809 = vmatpush1.bf16.msra.mxu0 %v4644_v2  ;;  %v4650_v6 = vld [vmem:[#allocation5 + $0xc0] ss:$16 sps:$4 sm:$0xff]   ;;  %s3981_s7 = sshll.u32 %s5745_s16, 3  ;;  %s5970_s15 = sld [smem:[#allocation29_spill]] }
  0xa9   : > { %1852 = vmatpush1.bf16.msra.mxu1 %v4645_v3  ;;  %v4648_v5 = vld [vmem:[#allocation5 + $0x2c4] ss:$16 sps:$4 sm:$0xff]   ;;  %1810 = vmatprep.subr.bf16.mxu0 %v4646_v4  ;;  %v4651_v7 = vld [vmem:[#allocation5 + $0x2c0] ss:$16 sps:$4 sm:$0xff]   ;;  %s559_s1 = scalar_lea.vmem [#allocation16], %s3981_s7  ;;  %s3807_s19 = scalar_lea.sflag [#allocation4], %s5745_s16 }
  0xaa   : > { %1853 = vmatprep.subr.bf16.mxu1 %v4648_v5  ;;  %v4652_v8 = vld [vmem:[#allocation5 + $0xa4] ss:$16 sps:$4 sm:$0xff]   ;;  %v4656_v10 = vld [vmem:[#allocation5 + $0xa0] ss:$16 sps:$4 sm:$0xff]   ;;  %s3820_s22 = sshll.u32 %s559_s1, 4  ;;  %p5971_p11 = scmp.ne.s32.totalorder %s5957_s24, 0  ;;  %s5866_s22 = int_to_ptr.vmem [resolvable:$true] %s3820_s22 }
  0xab   : > { %v4654_v9 = vld [vmem:[#allocation5 + $0x2a4] ss:$16 sps:$4 sm:$0xff]   ;;  %v4657_v11 = vld [vmem:[#allocation5 + $0x2a0] ss:$16 sps:$4 sm:$0xff]   ;;  %s5388_s23 = scalar_lea.vmem %s5866_s22, 128 }
  0xac   : > { %1811 = vmatpush1.bf16.msra.mxu0 %v4650_v6  ;;  %v4658_v12 = vld [vmem:[#allocation5 + $0x84] ss:$16 sps:$4 sm:$0xff]   ;;  %v4662_v14 = vld [vmem:[#allocation5 + $0x80] ss:$16 sps:$4 sm:$0xff]   ;;  %p5389_p10 = scmp.ne.s32.totalorder %s5866_s22, %s5388_s23 }
  0xad   : > { %1854 = vmatpush1.bf16.msra.mxu1 %v4651_v7  ;;  %1812 = vmatprep.subr.bf16.mxu0 %v4652_v8  ;;  %v4660_v13 = vld [vmem:[#allocation5 + $0x284] ss:$16 sps:$4 sm:$0xff]   ;;  %v4663_v15 = vld [vmem:[#allocation5 + $0x280] ss:$16 sps:$4 sm:$0xff]  }
  0xae   : > { %1855 = vmatprep.subr.bf16.mxu1 %v4654_v9  ;;  %v4664_v16 = vld [vmem:[#allocation5 + $0x64] ss:$16 sps:$4 sm:$0xff]   ;;  %v4668_v18 = vld [vmem:[#allocation5 + $0x60] ss:$16 sps:$4 sm:$0xff]   ;;  %v4753_v9 = vld [vmem:[#allocation5 + $0xec] ss:$16 sps:$4 sm:$0xff]   ;;  %p5390_p0 = pnand %p5389_p10, %p5971_p11 }
  0xaf   : > { %v4666_v17 = vld [vmem:[#allocation5 + $0x264] ss:$16 sps:$4 sm:$0xff]   ;;  %v4669_v19 = vld [vmem:[#allocation5 + $0x260] ss:$16 sps:$4 sm:$0xff]  }
  0xb0   : > { %1813 = vmatpush1.bf16.msra.mxu0 %v4656_v10  ;;  %v4670_v20 = vld [vmem:[#allocation5 + $0x44] ss:$16 sps:$4 sm:$0xff]   ;;  %v4674_v22 = vld [vmem:[#allocation5 + $0x40] ss:$16 sps:$4 sm:$0xff]   ;;  %p5391_p1 = pneg %p5390_p0 }
  0xb1   : > { %1856 = vmatpush1.bf16.msra.mxu1 %v4657_v11  ;;  %1814 = vmatprep.subr.bf16.mxu0 %v4658_v12  ;;  %v4672_v21 = vld [vmem:[#allocation5 + $0x244] ss:$16 sps:$4 sm:$0xff]   ;;  %v4675_v23 = vld [vmem:[#allocation5 + $0x240] ss:$16 sps:$4 sm:$0xff]   ;;  %v5488_v11 = vmov 0  }
  0xb2   : > { %1857 = vmatprep.subr.bf16.mxu1 %v4660_v13  ;;  %v4676_v24 = vld [vmem:[#allocation5 + $0x24] ss:$16 sps:$4 sm:$0xff]   ;;  %v4680_v26 = vld [vmem:[#allocation5 + $0x20] ss:$16 sps:$4 sm:$0xff]   ;;  %v4751_v13 = vld [vmem:[#allocation5 + $0xe8] ss:$16 sps:$4 sm:$0xff]  }
  0xb3   : > { %v4678_v25 = vld [vmem:[#allocation5 + $0x224] ss:$16 sps:$4 sm:$0xff]   ;;  %v4681_v27 = vld [vmem:[#allocation5 + $0x220] ss:$16 sps:$4 sm:$0xff]  }
  0xb4   : > { %1815 = vmatpush1.bf16.msra.mxu0 %v4662_v14  ;;  %v4682_v28 = vld [vmem:[#allocation5 + $0x4] ss:$16 sps:$4 sm:$0xff]   ;;  %v4686_v30 = vld [vmem:[#allocation5] ss:$16 sps:$4 sm:$0xff]  }
  0xb5   : > { %1858 = vmatpush1.bf16.msra.mxu1 %v4663_v15  ;;  %1816 = vmatprep.subr.bf16.mxu0 %v4664_v16  ;;  %v4684_v29 = vld [vmem:[#allocation5 + $0x204] ss:$16 sps:$4 sm:$0xff]   ;;  %v4687_v31 = vld [vmem:[#allocation5 + $0x200] ss:$16 sps:$4 sm:$0xff]   ;;  %v4760_v16 = vld [vmem:[#allocation5 + $0xcc] ss:$16 sps:$4 sm:$0xff]  }
  0xb6   : > { %1859 = vmatprep.subr.bf16.mxu1 %v4666_v17  ;;  %v4688_v32 = vld [vmem:[#allocation5 + $0x1e4] ss:$16 sps:$4 sm:$0xff]   ;;  %v4692_v34 = vld [vmem:[#allocation5 + $0x1e0] ss:$16 sps:$4 sm:$0xff]  }
  0xb7   : > { %v4690_v33 = vld [vmem:[#allocation5 + $0x3e4] ss:$16 sps:$4 sm:$0xff]   ;;  %v4693_v35 = vld [vmem:[#allocation5 + $0x3e0] ss:$16 sps:$4 sm:$0xff]  }
  0xb8   : > { %1817 = vmatpush1.bf16.msra.mxu0 %v4668_v18  ;;  %v4694_v36 = vld [vmem:[#allocation5 + $0x1c4] ss:$16 sps:$4 sm:$0xff]   ;;  %v4698_v38 = vld [vmem:[#allocation5 + $0x1c0] ss:$16 sps:$4 sm:$0xff]   ;;  %v4758_v18 = vld [vmem:[#allocation5 + $0xc8] ss:$16 sps:$4 sm:$0xff]  }
  0xb9   : > { %1860 = vmatpush1.bf16.msra.mxu1 %v4669_v19  ;;  %1818 = vmatprep.subr.bf16.mxu0 %v4670_v20  ;;  %v4696_v37 = vld [vmem:[#allocation5 + $0x3c4] ss:$16 sps:$4 sm:$0xff]   ;;  %v4699_v39 = vld [vmem:[#allocation5 + $0x3c0] ss:$16 sps:$4 sm:$0xff]   ;;  %v4766_v20 = vld [vmem:[#allocation5 + $0xac] ss:$16 sps:$4 sm:$0xff]  }
  0xba   : > { %1861 = vmatprep.subr.bf16.mxu1 %v4672_v21  ;;  %v4700_v40 = vld [vmem:[#allocation5 + $0x1a4] ss:$16 sps:$4 sm:$0xff]   ;;  %v4704_v42 = vld [vmem:[#allocation5 + $0x1a0] ss:$16 sps:$4 sm:$0xff]  }
  0xbb   : > { %v4702_v41 = vld [vmem:[#allocation5 + $0x3a4] ss:$16 sps:$4 sm:$0xff]   ;;  %v4705_v43 = vld [vmem:[#allocation5 + $0x3a0] ss:$16 sps:$4 sm:$0xff]  }
  0xbc   : > { %1819 = vmatpush1.bf16.msra.mxu0 %v4674_v22  ;;  %v4706_v44 = vld [vmem:[#allocation5 + $0x184] ss:$16 sps:$4 sm:$0xff]   ;;  %v4710_v46 = vld [vmem:[#allocation5 + $0x180] ss:$16 sps:$4 sm:$0xff]   ;;  %v4764_v22 = vld [vmem:[#allocation5 + $0xa8] ss:$16 sps:$4 sm:$0xff]  }
  0xbd   : > { %1862 = vmatpush1.bf16.msra.mxu1 %v4675_v23  ;;  %1820 = vmatprep.subr.bf16.mxu0 %v4676_v24  ;;  %v4708_v45 = vld [vmem:[#allocation5 + $0x384] ss:$16 sps:$4 sm:$0xff]   ;;  %v4711_v47 = vld [vmem:[#allocation5 + $0x380] ss:$16 sps:$4 sm:$0xff]   ;;  %v4772_v24 = vld [vmem:[#allocation5 + $0x8c] ss:$16 sps:$4 sm:$0xff]  }
  0xbe   : > { %1863 = vmatprep.subr.bf16.mxu1 %v4678_v25  ;;  %v4712_v48 = vld [vmem:[#allocation5 + $0x164] ss:$16 sps:$4 sm:$0xff]   ;;  %v4716_v52 = vld [vmem:[#allocation5 + $0x160] ss:$16 sps:$4 sm:$0xff]  }
  0xbf   : > { %v5772_v49 = vld [vmem:[%s5749_s20 + $0x4] ss:$28 sps:$4 sm:$0xff]   ;;  %v5775_v51 = vld [vmem:[%s5749_s20 + $0xc] ss:$28 sps:$4 sm:$0xff]   ;;  %v4757_v14 = vld [vmem:[%s5749_s20 + $0x18] ss:$28 sps:$4 sm:$0xff]  }
  0xc0   : > { %1821 = vmatpush1.bf16.msra.mxu0 %v4680_v26  ;;  %v4714_v50 = vld [vmem:[#allocation5 + $0x364] ss:$16 sps:$4 sm:$0xff]   ;;  %1840 = vmatprep.mubr.bf16.mxu0 %v5772_v49  ;;  %v4717_v53 = vld [vmem:[#allocation5 + $0x360] ss:$16 sps:$4 sm:$0xff]   ;;  %v4770_v26 = vld [vmem:[#allocation5 + $0x88] ss:$16 sps:$4 sm:$0xff]  }
  0xc1   : > { %1864 = vmatpush1.bf16.msra.mxu1 %v4681_v27  ;;  %1822 = vmatprep.subr.bf16.mxu0 %v4682_v28  ;;  %v4718_v54 = vld [vmem:[#allocation5 + $0x144] ss:$16 sps:$4 sm:$0xff]   ;;  %v4722_v56 = vld [vmem:[#allocation5 + $0x140] ss:$16 sps:$4 sm:$0xff]   ;;  %v4778_v28 = vld [vmem:[#allocation5 + $0x6c] ss:$16 sps:$4 sm:$0xff]  }
  0xc2   : > { %1865 = vmatprep.subr.bf16.mxu1 %v4684_v29  ;;  %1883 = vmatprep.mubr.bf16.mxu1 %v5775_v51  ;;  %v4720_v55 = vld [vmem:[#allocation5 + $0x344] ss:$16 sps:$4 sm:$0xff]   ;;  %v4723_v57 = vld [vmem:[#allocation5 + $0x340] ss:$16 sps:$4 sm:$0xff]  }
  0xc3   : > { %v4724_v58 = vld [vmem:[#allocation5 + $0x124] ss:$16 sps:$4 sm:$0xff]   ;;  %v4728_v60 = vld [vmem:[#allocation5 + $0x120] ss:$16 sps:$4 sm:$0xff]  }
  0xc4   : > { %1823 = vmatpush1.bf16.msra.mxu0 %v4686_v30  ;;  %v4726_v59 = vld [vmem:[#allocation5 + $0x324] ss:$16 sps:$4 sm:$0xff]   ;;  %v4729_v61 = vld [vmem:[#allocation5 + $0x320] ss:$16 sps:$4 sm:$0xff]   ;;  %v4776_v30 = vld [vmem:[#allocation5 + $0x68] ss:$16 sps:$4 sm:$0xff]  }
  0xc5   : > { %1866 = vmatpush1.bf16.msra.mxu1 %v4687_v31  ;;  %1824 = vmatprep.subr.bf16.mxu0 %v4688_v32  ;;  %v4730_v62 = vld [vmem:[#allocation5 + $0x104] ss:$16 sps:$4 sm:$0xff]   ;;  %v4734_v0 = vld [vmem:[#allocation5 + $0x100] ss:$16 sps:$4 sm:$0xff]   ;;  %v4784_v32 = vld [vmem:[#allocation5 + $0x4c] ss:$16 sps:$4 sm:$0xff]  }
  0xc6   : > { %1867 = vmatprep.subr.bf16.mxu1 %v4690_v33  ;;  %v4732_v63 = vld [vmem:[#allocation5 + $0x304] ss:$16 sps:$4 sm:$0xff]   ;;  %v4735_v1 = vld [vmem:[#allocation5 + $0x300] ss:$16 sps:$4 sm:$0xff]  }
  0xc7   : > { %v4744_v2 = vld [vmem:[#allocation5 + $0x4e4] ss:$16 sps:$4 sm:$0xff]   ;;  %v4742_v6 = vld [vmem:[#allocation5 + $0x4e0] ss:$16 sps:$4 sm:$0xff]  }
  0xc8   : > { %1825 = vmatpush2.bf16.msra.mxu0 %v4692_v34  ;;  %v4747_v3 = vld [vmem:[#allocation5 + $0x604] ss:$16 sps:$4 sm:$0xff]   ;;  %v4745_v7 = vld [vmem:[#allocation5 + $0x600] ss:$16 sps:$4 sm:$0xff]  }
  0xc9   : > { %1868 = vmatpush2.bf16.msra.mxu1 %v4693_v35  ;;  %1826 = vmatprep.subr.bf16.mxu0 %v4694_v36  ;;  %v5780_v4 = vld [vmem:[%s5749_s20] ss:$28 sps:$4 sm:$0xff]   ;;  %v4739_v5 = vld [vmem:[%s5749_s20 + $0x8] ss:$28 sps:$4 sm:$0xff]   ;;  %v5789_v33 = vld [vmem:[%s5749_s20 + $0x14] ss:$28 sps:$4 sm:$0xff]  }
  0xca   : > { %1869 = vmatprep.subr.bf16.mxu1 %v4696_v37  ;;  %v4750_v8 = vld [vmem:[#allocation5 + $0x4c4] ss:$16 sps:$4 sm:$0xff]   ;;  %v4748_v10 = vld [vmem:[#allocation5 + $0x4c0] ss:$16 sps:$4 sm:$0xff]   ;;  %v4782_v35 = vld [vmem:[#allocation5 + $0x48] ss:$16 sps:$4 sm:$0xff]  }
  0xcb   : > { %v4756_v12 = vld [vmem:[#allocation5 + $0x4a4] ss:$16 sps:$4 sm:$0xff]   ;;  %v4754_v15 = vld [vmem:[#allocation5 + $0x4a0] ss:$16 sps:$4 sm:$0xff]   ;;  %v4790_v37 = vld [vmem:[#allocation5 + $0x2c] ss:$16 sps:$4 sm:$0xff]  }
  0xcc   : > { %1827 = vmatpush2.bf16.msra.mxu0 %v4698_v38  ;;  %v4763_v17 = vld [vmem:[#allocation5 + $0x484] ss:$16 sps:$4 sm:$0xff]   ;;  %v4761_v19 = vld [vmem:[#allocation5 + $0x480] ss:$16 sps:$4 sm:$0xff]  }
  0xcd   : > { %1870 = vmatpush2.bf16.msra.mxu1 %v4699_v39  ;;  %1828 = vmatprep.subr.bf16.mxu0 %v4700_v40  ;;  %v4769_v21 = vld [vmem:[#allocation5 + $0x464] ss:$16 sps:$4 sm:$0xff]   ;;  %v4767_v23 = vld [vmem:[#allocation5 + $0x460] ss:$16 sps:$4 sm:$0xff]   ;;  %v4788_v39 = vld [vmem:[#allocation5 + $0x28] ss:$16 sps:$4 sm:$0xff]  }
  0xce   : > { %1871 = vmatprep.subr.bf16.mxu1 %v4702_v41  ;;  %v4775_v25 = vld [vmem:[#allocation5 + $0x444] ss:$16 sps:$4 sm:$0xff]   ;;  %v4773_v27 = vld [vmem:[#allocation5 + $0x440] ss:$16 sps:$4 sm:$0xff]   ;;  %v4796_v41 = vld [vmem:[#allocation5 + $0xc] ss:$16 sps:$4 sm:$0xff]  }
  0xcf   : > { %v4781_v29 = vld [vmem:[#allocation5 + $0x424] ss:$16 sps:$4 sm:$0xff]   ;;  %v4779_v31 = vld [vmem:[#allocation5 + $0x420] ss:$16 sps:$4 sm:$0xff]  }
  0xd0   : > { %1829 = vmatpush2.bf16.msra.mxu0 %v4704_v42  ;;  %v4787_v34 = vld [vmem:[#allocation5 + $0x404] ss:$16 sps:$4 sm:$0xff]   ;;  %v4785_v36 = vld [vmem:[#allocation5 + $0x400] ss:$16 sps:$4 sm:$0xff]  }
  0xd1   : > { %1872 = vmatpush2.bf16.msra.mxu1 %v4705_v43  ;;  %1830 = vmatprep.subr.bf16.mxu0 %v4706_v44  ;;  %v4793_v38 = vld [vmem:[#allocation5 + $0x5e4] ss:$16 sps:$4 sm:$0xff]   ;;  %v4791_v40 = vld [vmem:[#allocation5 + $0x5e0] ss:$16 sps:$4 sm:$0xff]   ;;  %v4794_v43 = vld [vmem:[#allocation5 + $0x8] ss:$16 sps:$4 sm:$0xff]  }
  0xd2   : > { %1873 = vmatprep.subr.bf16.mxu1 %v4708_v45  ;;  %v4799_v42 = vld [vmem:[#allocation5 + $0x5c4] ss:$16 sps:$4 sm:$0xff]   ;;  %v4797_v44 = vld [vmem:[#allocation5 + $0x5c0] ss:$16 sps:$4 sm:$0xff]   ;;  %v4802_v45 = vld [vmem:[#allocation5 + $0x1ec] ss:$16 sps:$4 sm:$0xff]  }
  0xd4   : > { %1831 = vmatpush2.bf16.msra.mxu0 %v4710_v46  ;;  %v4805_v46 = vld [vmem:[#allocation5 + $0x5a4] ss:$16 sps:$4 sm:$0xff]  }
  0xd5   : > { %1874 = vmatpush2.bf16.msra.mxu1 %v4711_v47  ;;  %1832 = vmatprep.subr.bf16.mxu0 %v4712_v48  ;;  %v4800_v47 = vld [vmem:[#allocation5 + $0x1e8] ss:$16 sps:$4 sm:$0xff]   ;;  %v4803_v48 = vld [vmem:[#allocation5 + $0x5a0] ss:$16 sps:$4 sm:$0xff]  }
  0xd6   : > { %1875 = vmatprep.subr.bf16.mxu1 %v4714_v50  ;;  %v4811_v50 = vld [vmem:[#allocation5 + $0x584] ss:$16 sps:$4 sm:$0xff]  }
  0xd8   : > { %1833 = vmatpush2.bf16.msra.mxu0 %v4716_v52  ;;  %v4806_v52 = vld [vmem:[#allocation5 + $0x1c8] ss:$16 sps:$4 sm:$0xff]  }
  0xd9   : > { %1876 = vmatpush2.bf16.msra.mxu1 %v4717_v53  ;;  %1834 = vmatprep.subr.bf16.mxu0 %v4718_v54  ;;  %v4809_v53 = vld [vmem:[#allocation5 + $0x580] ss:$16 sps:$4 sm:$0xff]   ;;  %v4814_v54 = vld [vmem:[#allocation5 + $0x1ac] ss:$16 sps:$4 sm:$0xff]  }
  0xda   : > { %1877 = vmatprep.subr.bf16.mxu1 %v4720_v55  ;;  %v4817_v55 = vld [vmem:[#allocation5 + $0x564] ss:$16 sps:$4 sm:$0xff]  }
  0xdc   : > { %1835 = vmatpush2.bf16.msra.mxu0 %v4722_v56  ;;  %v4812_v56 = vld [vmem:[#allocation5 + $0x1a8] ss:$16 sps:$4 sm:$0xff]  }
  0xdd   : > { %1878 = vmatpush2.bf16.msra.mxu1 %v4723_v57  ;;  %1836 = vmatprep.subr.bf16.mxu0 %v4724_v58  ;;  %v4815_v57 = vld [vmem:[#allocation5 + $0x560] ss:$16 sps:$4 sm:$0xff]   ;;  %v4820_v58 = vld [vmem:[#allocation5 + $0x18c] ss:$16 sps:$4 sm:$0xff]  }
  0xde   : > { %1879 = vmatprep.subr.bf16.mxu1 %v4726_v59  ;;  %v4823_v59 = vld [vmem:[#allocation5 + $0x544] ss:$16 sps:$4 sm:$0xff]  }
  0xe0   : > { %1837 = vmatpush2.bf16.msra.mxu0 %v4728_v60  ;;  %v4818_v60 = vld [vmem:[#allocation5 + $0x188] ss:$16 sps:$4 sm:$0xff]  }
  0xe1   : > { %1880 = vmatpush2.bf16.msra.mxu1 %v4729_v61  ;;  %1838 = vmatprep.subr.bf16.mxu0 %v4730_v62  ;;  %v4821_v61 = vld [vmem:[#allocation5 + $0x540] ss:$16 sps:$4 sm:$0xff]   ;;  %v4826_v62 = vld [vmem:[#allocation5 + $0x16c] ss:$16 sps:$4 sm:$0xff]  }
  0xe2   : > { %1881 = vmatprep.subr.bf16.mxu1 %v4732_v63  ;;  %v4829_v63 = vld [vmem:[#allocation5 + $0x524] ss:$16 sps:$4 sm:$0xff]  }
  0xe4   : > { %1839 = vmatpush2.bf16.msra.mxu0 %v4734_v0  ;;  %v4824_v0 = vld [vmem:[#allocation5 + $0x168] ss:$16 sps:$4 sm:$0xff]  }
  0xe5   : > { %1882 = vmatpush2.bf16.msra.mxu1 %v4735_v1  ;;  %1894 = vmatprep.subr.bf16.mxu0 %v4744_v2  ;;  %v4827_v1 = vld [vmem:[#allocation5 + $0x520] ss:$16 sps:$4 sm:$0xff]   ;;  %v4832_v2 = vld [vmem:[#allocation5 + $0x14c] ss:$16 sps:$4 sm:$0xff]  }
  0xe6   : > { %1951 = vmatprep.subr.bf16.mxu1 %v4747_v3  ;;  %v4835_v3 = vld [vmem:[#allocation5 + $0x504] ss:$16 sps:$4 sm:$0xff]  }
  0xe7   : > { %1841 = vmatmul.mubr.bf16.vlgmr.msra.gmra.mxu0 %v5780_v4 }
  0xe8   : > { %1884 = vmatmul.mubr.bf16.vlgmr.msra.gmra.mxu1 %v4739_v5  ;;  %1895 = vmatpush1.bf16.msra.mxu0 %v4742_v6  ;;  %v4830_v5 = vld [vmem:[#allocation5 + $0x148] ss:$16 sps:$4 sm:$0xff]   ;;  %v4833_v6 = vld [vmem:[#allocation5 + $0x500] ss:$16 sps:$4 sm:$0xff]  }
  0xe9   : > { %1952 = vmatpush1.bf16.msra.mxu1 %v4745_v7  ;;  %1896 = vmatprep.subr.bf16.mxu0 %v4750_v8  ;;  %v4841_v7 = vld [vmem:[#allocation5 + $0x12c] ss:$16 sps:$4 sm:$0xff]  }
  0xea   : > { %1969 = vmatprep.mubr.bf16.mxu1 %v5488_v11  ;;  %1980 = vmatprep.subr.bf16.mxu1 %v4753_v9  ;;  %v4844_v8 = vld [vmem:[#allocation5 + $0x2ec] ss:$16 sps:$4 sm:$0xff]  }
  0xeb   : > { %1926 = vmatprep.mubr.bf16.mxu0 %v5789_v33  ;;  %v5793_v9 = vld [vmem:[%s5749_s20 + $0x10] ss:$28 sps:$4 sm:$0xff]  }
  0xec   : > { %1897 = vmatpush1.bf16.msra.mxu0 %v4748_v10  ;;  %v4839_v10 = vld [vmem:[#allocation5 + $0x128] ss:$16 sps:$4 sm:$0xff]  }
  0xed   : > { %1898 = vmatprep.subr.bf16.mxu0 %v4756_v12  ;;  %v4842_v12 = vld [vmem:[#allocation5 + $0x2e8] ss:$16 sps:$4 sm:$0xff]  }
  0xf0   : > { %4185 = vmatmul.mubr.msk.bf16.vlgmr.msra.gmra.mxu1 %vm1804_vm0, %v4757_v14  ;;  %1899 = vmatpush1.bf16.msra.mxu0 %v4754_v15  ;;  %v4850_v14 = vld [vmem:[#allocation5 + $0x2cc] ss:$16 sps:$4 sm:$0xff]   ;;  %v4845_v15 = vld [vmem:[#allocation5 + $0x108] ss:$16 sps:$4 sm:$0xff]  }
  0xf1   : > { %1981 = vmatpush1.bf16.msra.mxu1 %v4751_v13  ;;  %1900 = vmatprep.subr.bf16.mxu0 %v4763_v17  ;;  %v4847_v13 = vld [vmem:[#allocation5 + $0x10c] ss:$16 sps:$4 sm:$0xff]  }
  0xf2   : > { %1982 = vmatprep.subr.bf16.mxu1 %v4760_v16  ;;  %2012 = vmatprep.mubr.bf16.mxu1 %v5772_v49  ;;  %v4808_v49 = vld [vmem:[#allocation5 + $0x1cc] ss:$16 sps:$4 sm:$0xff]   ;;  %v4848_v16 = vld [vmem:[#allocation5 + $0x2c8] ss:$16 sps:$4 sm:$0xff]  }
  0xf3   : > { %v4853_v17 = vld [vmem:[#allocation5 + $0x4ec] ss:$16 sps:$4 sm:$0xff]  }
  0xf4   : > { %1901 = vmatpush1.bf16.msra.mxu0 %v4761_v19  ;;  %v4851_v19 = vld [vmem:[#allocation5 + $0x4e8] ss:$16 sps:$4 sm:$0xff]  }
  0xf5   : > { %1983 = vmatpush1.bf16.msra.mxu1 %v4758_v18  ;;  %1902 = vmatprep.subr.bf16.mxu0 %v4769_v21  ;;  %v4856_v18 = vld [vmem:[#allocation5 + $0x2ac] ss:$16 sps:$4 sm:$0xff]  }
  0xf6   : > { %1984 = vmatprep.subr.bf16.mxu1 %v4766_v20  ;;  %v4854_v20 = vld [vmem:[#allocation5 + $0x2a8] ss:$16 sps:$4 sm:$0xff]   ;;  %v4859_v21 = vld [vmem:[#allocation5 + $0x4cc] ss:$16 sps:$4 sm:$0xff]  }
  0xf8   : > { %1903 = vmatpush1.bf16.msra.mxu0 %v4767_v23  ;;  %v4857_v23 = vld [vmem:[#allocation5 + $0x4c8] ss:$16 sps:$4 sm:$0xff]  }
  0xf9   : > { %1985 = vmatpush1.bf16.msra.mxu1 %v4764_v22  ;;  %1904 = vmatprep.subr.bf16.mxu0 %v4775_v25  ;;  %v4862_v22 = vld [vmem:[#allocation5 + $0x28c] ss:$16 sps:$4 sm:$0xff]  }
  0xfa   : > { %1986 = vmatprep.subr.bf16.mxu1 %v4772_v24  ;;  %v4860_v24 = vld [vmem:[#allocation5 + $0x288] ss:$16 sps:$4 sm:$0xff]   ;;  %v4865_v25 = vld [vmem:[#allocation5 + $0x4ac] ss:$16 sps:$4 sm:$0xff]  }
  0xfc   : > { %1905 = vmatpush1.bf16.msra.mxu0 %v4773_v27  ;;  %v4863_v27 = vld [vmem:[#allocation5 + $0x4a8] ss:$16 sps:$4 sm:$0xff]  }
  0xfd   : > { %1987 = vmatpush1.bf16.msra.mxu1 %v4770_v26  ;;  %1906 = vmatprep.subr.bf16.mxu0 %v4781_v29  ;;  %v4868_v26 = vld [vmem:[#allocation5 + $0x26c] ss:$16 sps:$4 sm:$0xff]  }
  0xfe   : > { %1988 = vmatprep.subr.bf16.mxu1 %v4778_v28  ;;  %v4866_v28 = vld [vmem:[#allocation5 + $0x268] ss:$16 sps:$4 sm:$0xff]   ;;  %v4874_v29 = vld [vmem:[#allocation5 + $0x24c] ss:$16 sps:$4 sm:$0xff]  }
 0x100   : > { %1907 = vmatpush1.bf16.msra.mxu0 %v4779_v31  ;;  %v4877_v31 = vld [vmem:[#allocation5 + $0x46c] ss:$16 sps:$4 sm:$0xff]  }
 0x101   : > { %1989 = vmatpush1.bf16.msra.mxu1 %v4776_v30  ;;  %1908 = vmatprep.subr.bf16.mxu0 %v4787_v34  ;;  %v4869_v30 = vld [vmem:[#allocation5 + $0x488] ss:$16 sps:$4 sm:$0xff]  }
 0x102   : > { %1990 = vmatprep.subr.bf16.mxu1 %v4784_v32  ;;  %v4880_v32 = vld [vmem:[#allocation5 + $0x22c] ss:$16 sps:$4 sm:$0xff]   ;;  %v4875_v34 = vld [vmem:[#allocation5 + $0x468] ss:$16 sps:$4 sm:$0xff]  }
 0x104   : > { %1909 = vmatpush1.bf16.msra.mxu0 %v4785_v36  ;;  %v4886_v36 = vld [vmem:[#allocation5 + $0x20c] ss:$16 sps:$4 sm:$0xff]  }
 0x105   : > { %1991 = vmatpush1.bf16.msra.mxu1 %v4782_v35  ;;  %1910 = vmatprep.subr.bf16.mxu0 %v4793_v38  ;;  %v4878_v35 = vld [vmem:[#allocation5 + $0x228] ss:$16 sps:$4 sm:$0xff]  }
 0x106   : > { %1992 = vmatprep.subr.bf16.mxu1 %v4790_v37  ;;  %v4881_v37 = vld [vmem:[#allocation5 + $0x448] ss:$16 sps:$4 sm:$0xff]  }
 0x107   : > { %v4884_v38 = vld [vmem:[#allocation5 + $0x208] ss:$16 sps:$4 sm:$0xff]  }
 0x108   : > { %1911 = vmatpush2.bf16.msra.mxu0 %v4791_v40  ;;  %v4892_v40 = vld [vmem:[#allocation5 + $0x3ec] ss:$16 sps:$4 sm:$0xff]  }
 0x109   : > { %1993 = vmatpush1.bf16.msra.mxu1 %v4788_v39  ;;  %1912 = vmatprep.subr.bf16.mxu0 %v4799_v42  ;;  %v4889_v39 = vld [vmem:[#allocation5 + $0x42c] ss:$16 sps:$4 sm:$0xff]   ;;  %v4890_v42 = vld [vmem:[#allocation5 + $0x3e8] ss:$16 sps:$4 sm:$0xff]  }
 0x10a   : > { %1994 = vmatprep.subr.bf16.mxu1 %v4796_v41  ;;  %v4887_v41 = vld [vmem:[#allocation5 + $0x428] ss:$16 sps:$4 sm:$0xff]  }
 0x10c   : > { %1913 = vmatpush2.bf16.msra.mxu0 %v4797_v44  ;;  %v4898_v44 = vld [vmem:[#allocation5 + $0x3cc] ss:$16 sps:$4 sm:$0xff]  }
 0x10d   : > { %1995 = vmatpush1.bf16.msra.mxu1 %v4794_v43  ;;  %1914 = vmatprep.subr.bf16.mxu0 %v4805_v46  ;;  %v4895_v43 = vld [vmem:[#allocation5 + $0x40c] ss:$16 sps:$4 sm:$0xff]   ;;  %v4896_v46 = vld [vmem:[#allocation5 + $0x3c8] ss:$16 sps:$4 sm:$0xff]  }
 0x10e   : > { %1996 = vmatprep.subr.bf16.mxu1 %v4802_v45  ;;  %v4893_v45 = vld [vmem:[#allocation5 + $0x408] ss:$16 sps:$4 sm:$0xff]  }
 0x110   : > { %1915 = vmatpush2.bf16.msra.mxu0 %v4803_v48  ;;  %v4904_v48 = vld [vmem:[#allocation5 + $0x3ac] ss:$16 sps:$4 sm:$0xff]  }
 0x111   : > { %1997 = vmatpush2.bf16.msra.mxu1 %v4800_v47  ;;  %1916 = vmatprep.subr.bf16.mxu0 %v4811_v50  ;;  %v4901_v47 = vld [vmem:[#allocation5 + $0x5ec] ss:$16 sps:$4 sm:$0xff]   ;;  %v4902_v50 = vld [vmem:[#allocation5 + $0x3a8] ss:$16 sps:$4 sm:$0xff]  }
 0x112   : > { %1998 = vmatprep.subr.bf16.mxu1 %v4808_v49  ;;  %v4899_v49 = vld [vmem:[#allocation5 + $0x5e8] ss:$16 sps:$4 sm:$0xff]  }
 0x114   : > { %1917 = vmatpush2.bf16.msra.mxu0 %v4809_v53  ;;  %v4910_v53 = vld [vmem:[#allocation5 + $0x38c] ss:$16 sps:$4 sm:$0xff]  }
 0x115   : > { %1999 = vmatpush2.bf16.msra.mxu1 %v4806_v52  ;;  %1918 = vmatprep.subr.bf16.mxu0 %v4817_v55  ;;  %v4907_v52 = vld [vmem:[#allocation5 + $0x5cc] ss:$16 sps:$4 sm:$0xff]   ;;  %v4908_v55 = vld [vmem:[#allocation5 + $0x388] ss:$16 sps:$4 sm:$0xff]  }
 0x116   : > { %2000 = vmatprep.subr.bf16.mxu1 %v4814_v54  ;;  %v4905_v54 = vld [vmem:[#allocation5 + $0x5c8] ss:$16 sps:$4 sm:$0xff]  }
 0x118   : > { %1919 = vmatpush2.bf16.msra.mxu0 %v4815_v57  ;;  %v4916_v57 = vld [vmem:[#allocation5 + $0x36c] ss:$16 sps:$4 sm:$0xff]  }
 0x119   : > { %2001 = vmatpush2.bf16.msra.mxu1 %v4812_v56  ;;  %1920 = vmatprep.subr.bf16.mxu0 %v4823_v59  ;;  %v4913_v56 = vld [vmem:[#allocation5 + $0x5ac] ss:$16 sps:$4 sm:$0xff]   ;;  %v4914_v59 = vld [vmem:[#allocation5 + $0x368] ss:$16 sps:$4 sm:$0xff]  }
 0x11a   : > { %2002 = vmatprep.subr.bf16.mxu1 %v4820_v58  ;;  %v4911_v58 = vld [vmem:[#allocation5 + $0x5a8] ss:$16 sps:$4 sm:$0xff]  }
 0x11c   : > { %1921 = vmatpush2.bf16.msra.mxu0 %v4821_v61  ;;  %v4922_v61 = vld [vmem:[#allocation5 + $0x34c] ss:$16 sps:$4 sm:$0xff]  }
 0x11d   : > { %2003 = vmatpush2.bf16.msra.mxu1 %v4818_v60  ;;  %1922 = vmatprep.subr.bf16.mxu0 %v4829_v63  ;;  %v4919_v60 = vld [vmem:[#allocation5 + $0x58c] ss:$16 sps:$4 sm:$0xff]   ;;  %v4920_v63 = vld [vmem:[#allocation5 + $0x348] ss:$16 sps:$4 sm:$0xff]  }
 0x11e   : > { %2004 = vmatprep.subr.bf16.mxu1 %v4826_v62  ;;  %v4917_v62 = vld [vmem:[#allocation5 + $0x588] ss:$16 sps:$4 sm:$0xff]  }
 0x120   : > { %1923 = vmatpush2.bf16.msra.mxu0 %v4827_v1  ;;  %v4928_v1 = vld [vmem:[#allocation5 + $0x32c] ss:$16 sps:$4 sm:$0xff]  }
 0x121   : > { %2005 = vmatpush2.bf16.msra.mxu1 %v4824_v0  ;;  %1924 = vmatprep.subr.bf16.mxu0 %v4835_v3  ;;  %v4925_v0 = vld [vmem:[#allocation5 + $0x56c] ss:$16 sps:$4 sm:$0xff]   ;;  %v4926_v3 = vld [vmem:[#allocation5 + $0x328] ss:$16 sps:$4 sm:$0xff]  }
 0x122   : > { %2006 = vmatprep.subr.bf16.mxu1 %v4832_v2  ;;  %v4923_v2 = vld [vmem:[#allocation5 + $0x568] ss:$16 sps:$4 sm:$0xff]  }
 0x124   : > { %1925 = vmatpush2.bf16.msra.mxu0 %v4833_v6  ;;  %v4934_v6 = vld [vmem:[#allocation5 + $0x30c] ss:$16 sps:$4 sm:$0xff]  }
 0x125   : > { %2007 = vmatpush2.bf16.msra.mxu1 %v4830_v5  ;;  %2023 = vmatprep.subr.bf16.mxu0 %v4844_v8  ;;  %v4931_v5 = vld [vmem:[#allocation5 + $0x54c] ss:$16 sps:$4 sm:$0xff]   ;;  %v4932_v8 = vld [vmem:[#allocation5 + $0x308] ss:$16 sps:$4 sm:$0xff]  }
 0x126   : > { %2008 = vmatprep.subr.bf16.mxu1 %v4841_v7  ;;  %v4929_v7 = vld [vmem:[#allocation5 + $0x548] ss:$16 sps:$4 sm:$0xff]  }
 0x127   : > { %1927 = vmatmul.mubr.bf16.vlgmr.msra.gmra.mxu0 %v5793_v9 }
 0x128   : > { %2024 = vmatpush1.bf16.msra.mxu0 %v4842_v12  ;;  %2055 = vmatprep.mubr.bf16.mxu0 %v5775_v51  ;;  %v4871_v51 = vld [vmem:[#allocation5 + $0x48c] ss:$16 sps:$4 sm:$0xff]  }
 0x129   : > { %2009 = vmatpush2.bf16.msra.mxu1 %v4839_v10  ;;  %2025 = vmatprep.subr.bf16.mxu0 %v4850_v14  ;;  %v4937_v10 = vld [vmem:[#allocation5 + $0x52c] ss:$16 sps:$4 sm:$0xff]   ;;  %v4938_v14 = vld [vmem:[#allocation5 + $0x608] ss:$16 sps:$4 sm:$0xff]  }
 0x12a   : > { %2010 = vmatprep.subr.bf16.mxu1 %v4847_v13  ;;  %v4940_v12 = vld [vmem:[#allocation5 + $0x60c] ss:$16 sps:$4 sm:$0xff]   ;;  %v4935_v13 = vld [vmem:[#allocation5 + $0x528] ss:$16 sps:$4 sm:$0xff]  }
 0x12c   : > { %2026 = vmatpush1.bf16.msra.mxu0 %v4848_v16  ;;  %v4946_v16 = vld [vmem:[#allocation8 + $0xac] ss:$12 sps:$4 sm:$0xff]  }
 0x12d   : > { %2011 = vmatpush2.bf16.msra.mxu1 %v4845_v15  ;;  %2027 = vmatprep.subr.bf16.mxu0 %v4856_v18  ;;  %v4943_v15 = vld [vmem:[#allocation5 + $0x50c] ss:$16 sps:$4 sm:$0xff]  }
 0x12e   : > { %2066 = vmatprep.subr.bf16.mxu1 %v4853_v17  ;;  %v4941_v17 = vld [vmem:[#allocation5 + $0x508] ss:$16 sps:$4 sm:$0xff]  }
 0x12f   : > { %v5176_v18 = vld [vmem:[%s5749_s20 + $0x8] ss:$28 sps:$4 sm:$0xff]  }
 0x130   : > { %2013 = vmatmul.mubr.bf16.vlgmr.msra.gmra.mxu1 %v5780_v4  ;;  %2028 = vmatpush1.bf16.msra.mxu0 %v4854_v20  ;;  %v4872_v4 = vld [vmem:[#allocation5 + $0x248] ss:$16 sps:$4 sm:$0xff]  }
 0x131   : > { %2067 = vmatpush1.bf16.msra.mxu1 %v4851_v19  ;;  %2029 = vmatprep.subr.bf16.mxu0 %v4862_v22  ;;  %v4944_v19 = vld [vmem:[#allocation8 + $0xa8] ss:$12 sps:$4 sm:$0xff]   ;;  %v5177_v22 = vld [vmem:[%s5749_s20 + $0x18] ss:$28 sps:$4 sm:$0xff]   ;;  %s4375_s20 = sshll.u32 %s5585_s14, 7  ;;  %s5491_s14 = smov [#allocation16]  }
 0x132   : > { %2068 = vmatprep.subr.bf16.mxu1 %v4859_v21  ;;  %2098 = vmatprep.mubr.bf16.mxu1 %v5789_v33  ;;  %v4883_v33 = vld [vmem:[#allocation5 + $0x44c] ss:$16 sps:$4 sm:$0xff]   ;;  %v4949_v20 = vld [vmem:[#allocation8 + $0x94] ss:$12 sps:$4 sm:$0xff]   ;;  %v4947_v21 = vld [vmem:[#allocation8 + $0x90] ss:$12 sps:$4 sm:$0xff]   ;;  %s5871_s30 = scalar_lea.hbm %s5970_s15, %s4375_s20 }
 0x133   : > { %s5392_s17 = sshll.u32 %s5491_s14, 4  ;;  %s5393_s17 = int_to_ptr.vmem [resolvable:$false] %s5392_s17 }
 0x134   : > { %2030 = vmatpush1.bf16.msra.mxu0 %v4860_v24  ;;  %v4950_v24 = vld [vmem:[#allocation8 + $0x78] ss:$12 sps:$4 sm:$0xff]   ;;  %s5394_s18 = scalar_lea.vmem %s5393_s17, 256  ;;  %p5395_p7 = scmp.lt.s32.totalorder %s5866_s22, %s5393_s17 }
 0x135   : > { %2069 = vmatpush1.bf16.msra.mxu1 %v4857_v23  ;;  %2031 = vmatprep.subr.bf16.mxu0 %v4868_v26  ;;  %v4952_v23 = vld [vmem:[#allocation8 + $0x7c] ss:$12 sps:$4 sm:$0xff]   ;;  %v4953_v26 = vld [vmem:[#allocation8 + $0x60] ss:$12 sps:$4 sm:$0xff]   ;;  %p5396_p9 = scmp.lt.s32.totalorder %s5394_s18, %s5388_s23 }
 0x136   : > { %2070 = vmatprep.subr.bf16.mxu1 %v4865_v25  ;;  %v4955_v25 = vld [vmem:[#allocation8 + $0x64] ss:$12 sps:$4 sm:$0xff]  }
 0x137   : > { %p5397_p6 = por %p5396_p9, %p5395_p7 }
 0x138   : > { %2032 = vmatpush1.bf16.msra.mxu0 %v4866_v28  ;;  %v4956_v28 = vld [vmem:[#allocation8 + $0x48] ss:$12 sps:$4 sm:$0xff]  }
 0x139   : > { %2071 = vmatpush1.bf16.msra.mxu1 %v4863_v27  ;;  %2033 = vmatprep.subr.bf16.mxu0 %v4874_v29  ;;  %v4958_v27 = vld [vmem:[#allocation8 + $0x4c] ss:$12 sps:$4 sm:$0xff]   ;;  %p5398_p12 = pnand %p5397_p6, %p5391_p1 }
 0x13a   : > { %2072 = vmatprep.subr.bf16.mxu1 %v4871_v51  ;;  %v4996_v51 = vld [vmem:[#allocation8 + $0x228] ss:$12 sps:$4 sm:$0xff]   ;;  %v4998_v29 = vld [vmem:[#allocation8 + $0x22c] ss:$12 sps:$4 sm:$0xff]  }
 0x13c   : > { %2034 = vmatpush1.bf16.msra.mxu0 %v4872_v4  ;;  %v5001_v4 = vld [vmem:[#allocation8 + $0x210] ss:$12 sps:$4 sm:$0xff]  }
 0x13d   : > { %2073 = vmatpush1.bf16.msra.mxu1 %v4869_v30  ;;  %2035 = vmatprep.subr.bf16.mxu0 %v4880_v32  ;;  %v4959_v30 = vld [vmem:[#allocation8 + $0x30] ss:$12 sps:$4 sm:$0xff]  }
 0x13e   : > { %2074 = vmatprep.subr.bf16.mxu1 %v4877_v31  ;;  %v5003_v31 = vld [vmem:[#allocation8 + $0x214] ss:$12 sps:$4 sm:$0xff]   ;;  %v4964_v32 = vld [vmem:[#allocation8 + $0x1c] ss:$12 sps:$4 sm:$0xff]  }
 0x140   : > { %2036 = vmatpush1.bf16.msra.mxu0 %v4878_v35  ;;  %v5006_v35 = vld [vmem:[#allocation8 + $0x1f8] ss:$12 sps:$4 sm:$0xff]  }
 0x141   : > { %2075 = vmatpush1.bf16.msra.mxu1 %v4875_v34  ;;  %2037 = vmatprep.subr.bf16.mxu0 %v4886_v36  ;;  %v4962_v34 = vld [vmem:[#allocation8 + $0x18] ss:$12 sps:$4 sm:$0xff]  }
 0x142   : > { %2076 = vmatprep.subr.bf16.mxu1 %v4883_v33  ;;  %v5008_v33 = vld [vmem:[#allocation8 + $0x1fc] ss:$12 sps:$4 sm:$0xff]   ;;  %v4967_v36 = vld [vmem:[#allocation8 + $0x4] ss:$12 sps:$4 sm:$0xff]  }
 0x144   : > { %2038 = vmatpush1.bf16.msra.mxu0 %v4884_v38  ;;  %v5011_v38 = vld [vmem:[#allocation8 + $0x1e0] ss:$12 sps:$4 sm:$0xff]  }
 0x145   : > { %2077 = vmatpush1.bf16.msra.mxu1 %v4881_v37  ;;  %2039 = vmatprep.subr.bf16.mxu0 %v4892_v40  ;;  %v4965_v37 = vld [vmem:[#allocation8] ss:$12 sps:$4 sm:$0xff]  }
 0x146   : > { %2078 = vmatprep.subr.bf16.mxu1 %v4889_v39  ;;  %v5013_v39 = vld [vmem:[#allocation8 + $0x1e4] ss:$12 sps:$4 sm:$0xff]   ;;  %v4970_v40 = vld [vmem:[#allocation8 + $0x16c] ss:$12 sps:$4 sm:$0xff]  }
 0x148   : > { %2040 = vmatpush2.bf16.msra.mxu0 %v4890_v42  ;;  %v5016_v42 = vld [vmem:[#allocation8 + $0x1c8] ss:$12 sps:$4 sm:$0xff]  }
 0x149   : > { %2079 = vmatpush1.bf16.msra.mxu1 %v4887_v41  ;;  %2041 = vmatprep.subr.bf16.mxu0 %v4898_v44  ;;  %v4968_v41 = vld [vmem:[#allocation8 + $0x168] ss:$12 sps:$4 sm:$0xff]  }
 0x14a   : > { %2080 = vmatprep.subr.bf16.mxu1 %v4895_v43  ;;  %v5018_v43 = vld [vmem:[#allocation8 + $0x1cc] ss:$12 sps:$4 sm:$0xff]   ;;  %v4973_v44 = vld [vmem:[#allocation8 + $0x154] ss:$12 sps:$4 sm:$0xff]  }
 0x14c   : > { %2042 = vmatpush2.bf16.msra.mxu0 %v4896_v46  ;;  %v5021_v46 = vld [vmem:[#allocation8 + $0x1b0] ss:$12 sps:$4 sm:$0xff]  }
 0x14d   : > { %2081 = vmatpush1.bf16.msra.mxu1 %v4893_v45  ;;  %2043 = vmatprep.subr.bf16.mxu0 %v4904_v48  ;;  %v4971_v45 = vld [vmem:[#allocation8 + $0x150] ss:$12 sps:$4 sm:$0xff]  }
 0x14e   : > { %2082 = vmatprep.subr.bf16.mxu1 %v4901_v47  ;;  %v5023_v47 = vld [vmem:[#allocation8 + $0x1b4] ss:$12 sps:$4 sm:$0xff]   ;;  %v4976_v48 = vld [vmem:[#allocation8 + $0x13c] ss:$12 sps:$4 sm:$0xff]  }
 0x150   : > { %2044 = vmatpush2.bf16.msra.mxu0 %v4902_v50  ;;  %v5026_v50 = vld [vmem:[#allocation8 + $0x198] ss:$12 sps:$4 sm:$0xff]  }
 0x151   : > { %2083 = vmatpush2.bf16.msra.mxu1 %v4899_v49  ;;  %2045 = vmatprep.subr.bf16.mxu0 %v4910_v53  ;;  %v4974_v49 = vld [vmem:[#allocation8 + $0x138] ss:$12 sps:$4 sm:$0xff]  }
 0x152   : > { %2084 = vmatprep.subr.bf16.mxu1 %v4907_v52  ;;  %v5028_v52 = vld [vmem:[#allocation8 + $0x19c] ss:$12 sps:$4 sm:$0xff]   ;;  %v4979_v53 = vld [vmem:[#allocation8 + $0x124] ss:$12 sps:$4 sm:$0xff]  }
 0x154   : > { %2046 = vmatpush2.bf16.msra.mxu0 %v4908_v55  ;;  %v5031_v55 = vld [vmem:[#allocation8 + $0x184] ss:$12 sps:$4 sm:$0xff]  }
 0x155   : > { %2085 = vmatpush2.bf16.msra.mxu1 %v4905_v54  ;;  %2047 = vmatprep.subr.bf16.mxu0 %v4916_v57  ;;  %v5029_v54 = vld [vmem:[#allocation8 + $0x180] ss:$12 sps:$4 sm:$0xff]  }
 0x156   : > { %2086 = vmatprep.subr.bf16.mxu1 %v4913_v56  ;;  %v4977_v56 = vld [vmem:[#allocation8 + $0x120] ss:$12 sps:$4 sm:$0xff]  }
 0x157   : > { %v5034_v57 = vld [vmem:[#allocation8 + $0x2ec] ss:$12 sps:$4 sm:$0xff]  }
 0x158   : > { %2048 = vmatpush2.bf16.msra.mxu0 %v4914_v59  ;;  %v5032_v59 = vld [vmem:[#allocation8 + $0x2e8] ss:$12 sps:$4 sm:$0xff]  }
 0x159   : > { %2087 = vmatpush2.bf16.msra.mxu1 %v4911_v58  ;;  %2049 = vmatprep.subr.bf16.mxu0 %v4922_v61  ;;  %v4982_v58 = vld [vmem:[#allocation8 + $0x10c] ss:$12 sps:$4 sm:$0xff]   ;;  %v5037_v61 = vld [vmem:[#allocation8 + $0x2d4] ss:$12 sps:$4 sm:$0xff]  }
 0x15a   : > { %2088 = vmatprep.subr.bf16.mxu1 %v4919_v60  ;;  %v4980_v60 = vld [vmem:[#allocation8 + $0x108] ss:$12 sps:$4 sm:$0xff]  }
 0x15c   : > { %2050 = vmatpush2.bf16.msra.mxu0 %v4920_v63  ;;  %v5035_v63 = vld [vmem:[#allocation8 + $0x2d0] ss:$12 sps:$4 sm:$0xff]  }
 0x15d   : > { %2089 = vmatpush2.bf16.msra.mxu1 %v4917_v62  ;;  %2051 = vmatprep.subr.bf16.mxu0 %v4928_v1  ;;  %v4985_v62 = vld [vmem:[#allocation8 + $0xf4] ss:$12 sps:$4 sm:$0xff]   ;;  %v5040_v1 = vld [vmem:[#allocation8 + $0x2bc] ss:$12 sps:$4 sm:$0xff]  }
 0x15e   : > { %2090 = vmatprep.subr.bf16.mxu1 %v4925_v0  ;;  %v4983_v0 = vld [vmem:[#allocation8 + $0xf0] ss:$12 sps:$4 sm:$0xff]  }
 0x160   : > { %2052 = vmatpush2.bf16.msra.mxu0 %v4926_v3  ;;  %v5038_v3 = vld [vmem:[#allocation8 + $0x2b8] ss:$12 sps:$4 sm:$0xff]  }
 0x161   : > { %2091 = vmatpush2.bf16.msra.mxu1 %v4923_v2  ;;  %2053 = vmatprep.subr.bf16.mxu0 %v4934_v6  ;;  %v4988_v2 = vld [vmem:[#allocation8 + $0xdc] ss:$12 sps:$4 sm:$0xff]   ;;  %v4991_v6 = vld [vmem:[#allocation8 + $0xc4] ss:$12 sps:$4 sm:$0xff]  }
 0x162   : > { %2092 = vmatprep.subr.bf16.mxu1 %v4931_v5  ;;  %v4986_v5 = vld [vmem:[#allocation8 + $0xd8] ss:$12 sps:$4 sm:$0xff]  }
 0x164   : > { %2054 = vmatpush2.bf16.msra.mxu0 %v4932_v8  ;;  %v5043_v8 = vld [vmem:[#allocation8 + $0x2a4] ss:$12 sps:$4 sm:$0xff]  }
 0x165   : > { %2093 = vmatpush2.bf16.msra.mxu1 %v4929_v7  ;;  %2123 = vmatprep.subr.bf16.mxu0 %v4940_v12  ;;  %v4989_v7 = vld [vmem:[#allocation8 + $0xc0] ss:$12 sps:$4 sm:$0xff]  }
 0x166   : > { %2094 = vmatprep.subr.bf16.mxu1 %v4937_v10  ;;  %v4992_v10 = vld [vmem:[#allocation8 + $0x170] ss:$12 sps:$4 sm:$0xff]   ;;  %v5041_v12 = vld [vmem:[#allocation8 + $0x2a0] ss:$12 sps:$4 sm:$0xff]  }
 0x167   : > { %2056 = vmatmul.mubr.bf16.vlgmr.msra.gmra.mxu0 %v5176_v18  ;;  %v5050_v18 = vld [vmem:[#allocation8 + $0x258] ss:$12 sps:$4 sm:$0xff]  }
 0x168   : > { %2124 = vmatpush1.bf16.msra.mxu0 %v4938_v14  ;;  %2141 = vmatprep.mubr.bf16.mxu0 %v5488_v11  ;;  %v5044_v14 = vld [vmem:[#allocation8 + $0x288] ss:$12 sps:$4 sm:$0xff]  }
 0x169   : > { %2095 = vmatpush2.bf16.msra.mxu1 %v4935_v13  ;;  %2821 = vmatprep.subr.bf16.mxu0 %v4946_v16  ;;  %v5046_v13 = vld [vmem:[#allocation8 + $0x28c] ss:$12 sps:$4 sm:$0xff]   ;;  %v5047_v16 = vld [vmem:[#allocation8 + $0x270] ss:$12 sps:$4 sm:$0xff]  }
 0x16a   : > { %2096 = vmatprep.subr.bf16.mxu1 %v4943_v15  ;;  %v5049_v15 = vld [vmem:[#allocation8 + $0x274] ss:$12 sps:$4 sm:$0xff]  }
 0x16d   : > { %2097 = vmatpush2.bf16.msra.mxu1 %v4941_v17  ;;  %v5052_v17 = vld [vmem:[#allocation8 + $0x25c] ss:$12 sps:$4 sm:$0xff]  }
 0x16e   : > { %2864 = vmatprep.subr.bf16.mxu1 %v4998_v29 }
 0x16f   : > { %4186 = vmatmul.mubr.msk.bf16.vlgmr.msra.gmra.mxu0 %vm1804_vm0, %v5177_v22 }
 0x170   : > { %2099 = vmatmul.mubr.bf16.vlgmr.msra.gmra.mxu1 %v5793_v9  ;;  %2822 = vmatpush1.bf16.msra.mxu0 %v4944_v19  ;;  %v4961_v9 = vld [vmem:[#allocation8 + $0x34] ss:$12 sps:$4 sm:$0xff]   ;;  %v5055_v19 = vld [vmem:[#allocation8 + $0x244] ss:$12 sps:$4 sm:$0xff]  }
 0x171   : > { %2823 = vmatprep.subr.bf16.mxu0 %v4949_v20  ;;  %2865 = vmatpush1.bf16.msra.mxu1 %v4996_v51  ;;  %v5053_v20 = vld [vmem:[#allocation8 + $0x240] ss:$12 sps:$4 sm:$0xff]  }
 0x172   : > { %2866 = vmatprep.subr.bf16.mxu1 %v5003_v31 }
 0x174   : > { %2824 = vmatpush1.bf16.msra.mxu0 %v4947_v21  ;;  %v5056_v21 = vld [vmem:[#allocation8 + $0x2f0] ss:$12 sps:$4 sm:$0xff]  }
 0x175   : > { %2825 = vmatprep.subr.bf16.mxu0 %v4952_v23  ;;  %2867 = vmatpush1.bf16.msra.mxu1 %v5001_v4  ;;  %v769_v23 = vlaneseq }
 0x176   : > { %2868 = vmatprep.subr.bf16.mxu1 %v5008_v33 }
 0x178   : > { %2826 = vmatpush1.bf16.msra.mxu0 %v4950_v24 }
 0x179   : > { %2827 = vmatprep.subr.bf16.mxu0 %v4955_v25  ;;  %2869 = vmatpush1.bf16.msra.mxu1 %v5006_v35  ;;  %v5804_v25 = vshrl.u32 %v769_v23, 7 }
 0x17a   : > { %2870 = vmatprep.subr.bf16.mxu1 %v5013_v39 }
 0x17b   : > { %v5810_v51 = vsub.s32 0, %v5804_v25 }
 0x17c   : > { %2828 = vmatpush1.bf16.msra.mxu0 %v4953_v26 }
 0x17d   : > { %2829 = vmatprep.subr.bf16.mxu0 %v4958_v27  ;;  %2871 = vmatpush1.bf16.msra.mxu1 %v5011_v38 }
 0x17e   : > { %2872 = vmatprep.subr.bf16.mxu1 %v5018_v43 }
 0x180   : > { %2830 = vmatpush1.bf16.msra.mxu0 %v4956_v28  ;;  %v5807_v28 = vsub.s32 1, %v5804_v25 }
 0x181   : > { %2831 = vmatprep.subr.bf16.mxu0 %v4961_v9  ;;  %2873 = vmatpush1.bf16.msra.mxu1 %v5016_v42  ;;  %v5812_v9 = vld [vmem:[#allocation7] sm:$0xf] }
 0x182   : > { %2874 = vmatprep.subr.bf16.mxu1 %v5023_v47  ;;  %v776_v4 = vrot.slane %v5812_v9, %v5807_v28  ;;  %v772_v31 = vrot.slane %v5812_v9, %v5810_v51 }
 0x184   : > { %2832 = vmatpush1.bf16.msra.mxu0 %v4959_v30 }
 0x185   : > { %2833 = vmatprep.subr.bf16.mxu0 %v4964_v32  ;;  %2875 = vmatpush1.bf16.msra.mxu1 %v5021_v46 }
 0x186   : > { %2876 = vmatprep.subr.bf16.mxu1 %v5028_v52 }
 0x188   : > { %2834 = vmatpush1.bf16.msra.mxu0 %v4962_v34 }
 0x189   : > { %2835 = vmatprep.subr.bf16.mxu0 %v4967_v36  ;;  %2877 = vmatpush1.bf16.msra.mxu1 %v5026_v50 }
 0x18a   : > { %2878 = vmatprep.subr.bf16.mxu1 %v5031_v55 }
 0x18c   : > { %2836 = vmatpush1.bf16.msra.mxu0 %v4965_v37 }
 0x18d   : > { %2837 = vmatprep.subr.bf16.mxu0 %v4970_v40  ;;  %2879 = vmatpush1.bf16.msra.mxu1 %v5029_v54 }
 0x18e   : > { %2880 = vmatprep.subr.bf16.mxu1 %v5034_v57 }
 0x190   : > { %2838 = vmatpush2.bf16.msra.mxu0 %v4968_v41 }
 0x191   : > { %2839 = vmatprep.subr.bf16.mxu0 %v4973_v44  ;;  %2881 = vmatpush2.bf16.msra.mxu1 %v5032_v59 }
 0x192   : > { %2882 = vmatprep.subr.bf16.mxu1 %v5037_v61 }
 0x194   : > { %2840 = vmatpush2.bf16.msra.mxu0 %v4971_v45 }
 0x195   : > { %2841 = vmatprep.subr.bf16.mxu0 %v4976_v48  ;;  %2883 = vmatpush2.bf16.msra.mxu1 %v5035_v63 }
 0x196   : > { %2884 = vmatprep.subr.bf16.mxu1 %v5040_v1 }
 0x198   : > { %2842 = vmatpush2.bf16.msra.mxu0 %v4974_v49 }
 0x199   : > { %2843 = vmatprep.subr.bf16.mxu0 %v4979_v53  ;;  %2885 = vmatpush2.bf16.msra.mxu1 %v5038_v3  ;;  %v4995_v3 = vld [vmem:[#allocation8 + $0x98] ss:$12 sps:$4 sm:$0xff]  }
 0x19a   : > { %2886 = vmatprep.subr.bf16.mxu1 %v5043_v8  ;;  %v5005_v8 = vld [vmem:[#allocation8 + $0x68] ss:$12 sps:$4 sm:$0xff]  }
 0x19c   : > { %2844 = vmatpush2.bf16.msra.mxu0 %v4977_v56 }
 0x19d   : > { %2845 = vmatprep.subr.bf16.mxu0 %v4982_v58  ;;  %2887 = vmatpush2.bf16.msra.mxu1 %v5041_v12  ;;  %v5010_v12 = vld [vmem:[#allocation8 + $0x50] ss:$12 sps:$4 sm:$0xff]  }
 0x19e   : > { %2888 = vmatprep.subr.bf16.mxu1 %v5046_v13  ;;  %v5014_v13 = vld [vmem:[#allocation8 + $0xf8] ss:$12 sps:$4 sm:$0xff]  }
 0x1a0   : > { %2846 = vmatpush2.bf16.msra.mxu0 %v4980_v60 }
 0x1a1   : > { %2847 = vmatprep.subr.bf16.mxu0 %v4985_v62  ;;  %2889 = vmatpush2.bf16.msra.mxu1 %v5044_v14  ;;  %v5015_v14 = vld [vmem:[#allocation8 + $0x38] ss:$12 sps:$4 sm:$0xff]  }
 0x1a2   : > { %2890 = vmatprep.subr.bf16.mxu1 %v5049_v15  ;;  %v5019_v15 = vld [vmem:[#allocation8 + $0xe0] ss:$12 sps:$4 sm:$0xff]  }
 0x1a4   : > { %2848 = vmatpush2.bf16.msra.mxu0 %v4983_v0  ;;  %v4993_v0 = vld [vmem:[#allocation8 + $0xb0] ss:$12 sps:$4 sm:$0xff]  }
 0x1a5   : > { %2849 = vmatprep.subr.bf16.mxu0 %v4988_v2  ;;  %2891 = vmatpush2.bf16.msra.mxu1 %v5047_v16  ;;  %v4994_v2 = vld [vmem:[#allocation8 + $0x158] ss:$12 sps:$4 sm:$0xff]   ;;  %v5020_v16 = vld [vmem:[#allocation8 + $0x20] ss:$12 sps:$4 sm:$0xff]  }
 0x1a6   : > { %2892 = vmatprep.subr.bf16.mxu1 %v5052_v17  ;;  %v5024_v17 = vld [vmem:[#allocation8 + $0xc8] ss:$12 sps:$4 sm:$0xff]  }
 0x1a7   : > { %v1842_v26 = vpop.f32.mrf.mxu0 }
 0x1a8   : > { %2850 = vmatpush2.bf16.msra.mxu0 %v4986_v5  ;;  %v1885_v22 = vpop.f32.mrf.mxu1  ;;  %v1843_v33 = vadd.f32 %v1842_v26, %v772_v31  ;;  %v4999_v5 = vld [vmem:[#allocation8 + $0x140] ss:$12 sps:$4 sm:$0xff]  }
 0x1a9   : > { %2851 = vmatprep.subr.bf16.mxu0 %v4991_v6  ;;  %2893 = vmatpush2.bf16.msra.mxu1 %v5050_v18  ;;  %v1844_v29 = vpop.f32.mrf.mxu0  ;;  %v5000_v6 = vld [vmem:[#allocation8 + $0x80] ss:$12 sps:$4 sm:$0xff]   ;;  %v5025_v18 = vld [vmem:[#allocation8 + $0x8] ss:$12 sps:$4 sm:$0xff]  }
 0x1aa   : > { %2894 = vmatprep.subr.bf16.mxu1 %v5055_v19  ;;  %v1887_v24 = vpop.f32.mrf.mxu1  ;;  %v1845_v35 = vadd.f32 %v1844_v29, %v776_v4  ;;  %v1886_v42 = vadd.f32 %v1885_v22, %v1843_v33  ;;  %v779_v22 = vsub.s32 2, %v5804_v25 }
 0x1ab   : > { %v1846_v32 = vpop.f32.mrf.mxu0 }
 0x1ac   : > { %2852 = vmatpush2.bf16.msra.mxu0 %v4989_v7  ;;  %v1889_v27 = vpop.f32.mrf.mxu1  ;;  %v1847_v37 = vadd.f32 %v1846_v32, %v772_v31  ;;  %v1888_v40 = vadd.f32 %v1887_v24, %v1845_v35  ;;  %v5004_v7 = vld [vmem:[#allocation8 + $0x128] ss:$12 sps:$4 sm:$0xff]   ;;  %v780_v29 = vrot.slane %v5812_v9, %v779_v22 }
 0x1ad   : > { %4381 = vmatprep.subr.bf16.mxu0 %v4992_v10  ;;  %2895 = vmatpush2.bf16.msra.mxu1 %v5053_v20  ;;  %v1848_v36 = vpop.f32.mrf.mxu0  ;;  %v5009_v10 = vld [vmem:[#allocation8 + $0x110] ss:$12 sps:$4 sm:$0xff]  }
 0x1ae   : > { %4403 = vmatprep.subr.bf16.mxu1 %v5056_v21  ;;  %v1891_v30 = vpop.f32.mrf.mxu1  ;;  %v1849_v41 = vadd.f32 %v1848_v36, %v776_v4  ;;  %v1890_v44 = vadd.f32 %v1889_v27, %v1847_v37  ;;  %v783_v21 = vsub.s32 3, %v5804_v25  ;;  %v5147_v25 = vld [vmem:[#allocation11 + $0x30] sm:$0xff]  }
 0x1b0   : > { %v1971_v34 = vpop.f32.mrf.mxu1  ;;  %v1892_v49 = vadd.f32 %v1891_v30, %v1849_v41  ;;  %v784_v27 = vrot.slane %v5812_v9, %v783_v21  ;;  %v5071_v21 = vld [vmem:[#allocation8 + $0x188] ss:$12 sps:$4 sm:$0xff]  }
 0x1b2   : > { %v1973_v38 = vpop.f32.mrf.mxu1 }
 0x1b4   : > { %v1975_v46 = vpop.f32.mrf.mxu1 }
 0x1b6   : > { %v1977_v56 = vpop.f32.mrf.mxu1 }
 0x1e7   : > { %v1928_v39 = vpop.f32.mrf.mxu0 }
 0x1e8   : > { %v1929_v47 = vadd.f32 %v1928_v39, %v1886_v42 }
 0x1e9   : > { %v1930_v43 = vpop.f32.mrf.mxu0 }
 0x1ea   : > { %v1931_v45 = vadd.f32 %v1930_v43, %v1888_v40  ;;  %v1972_v57 = vadd.f32 %v1971_v34, %v1929_v47 }
 0x1eb   : > { %v1932_v48 = vpop.f32.mrf.mxu0 }
 0x1ec   : > { %v1933_v50 = vadd.f32 %v1932_v48, %v1890_v44  ;;  %v1974_v53 = vadd.f32 %v1973_v38, %v1931_v45  ;;  %v2152_v62 = vmax.f32 %v1972_v57, 0.0 }
 0x1ed   : > { %v1934_v52 = vpop.f32.mrf.mxu0 }
 0x1ee   : > { %v1976_v54 = vadd.f32 %v1975_v46, %v1933_v50  ;;  %v1935_v55 = vadd.f32 %v1934_v52, %v1892_v49  ;;  %v2153_v60 = vmax.f32 %v1974_v53, 0.0 }
 0x1f0   : > { %v1978_v58 = vadd.f32 %v1977_v56, %v1935_v55  ;;  %v2156_v59 = vmax.f32 %v1976_v54, 0.0  ;;  %v2014_v19 = vpop.f32.mrf.mxu1 }
 0x1f1   : > { %v2015_v34 = vadd.f32 %v2014_v19, %v780_v29  ;;  %v5069_v19 = vld [vmem:[#allocation8 + $0x1a0] ss:$12 sps:$4 sm:$0xff]  }
 0x1f2   : > { %v2157_v61 = vmax.f32 %v1978_v58, 0.0  ;;  %v2160_v1 = vpack.c.bf16 %v2156_v59, %v2152_v62  ;;  %v2016_v20 = vpop.f32.mrf.mxu1 }
 0x1f3   : > { %v2017_v32 = vadd.f32 %v2016_v20, %v784_v27  ;;  %v5070_v20 = vld [vmem:[#allocation8 + $0x248] ss:$12 sps:$4 sm:$0xff]  }
 0x1f4   : > { %v2161_v63 = vpack.c.bf16 %v2157_v61, %v2153_v60  ;;  %v2018_v24 = vpop.f32.mrf.mxu1  ;;  %v5057_v61 = vld [vmem:[#allocation8 + $0x230] ss:$12 sps:$4 sm:$0xff]  }
 0x1f5   : > { %v2019_v36 = vadd.f32 %v2018_v24, %v780_v29  ;;  %v5081_v24 = vld [vmem:[#allocation10 + $0x40] ss:$8 sps:$4 sm:$0xff]  }
 0x1f6   : > { %2853 = vmatprep.mubr.bf16.mxu0 %v2161_v63  ;;  %v2020_v4 = vpop.f32.mrf.mxu1  ;;  %v5087_v29 = vld [vmem:[#allocation10 + $0x20] ss:$8 sps:$4 sm:$0xff]  }
 0x1f7   : > { %2854 = vmatmul.mubr.bf16.vlgmr.msra.gmra.mxu0 %v2160_v1  ;;  %v2021_v41 = vadd.f32 %v2020_v4, %v784_v27  ;;  %v5084_v27 = vld [vmem:[#allocation10 + $0x30] ss:$8 sps:$4 sm:$0xff]   ;;  %v5092_v4 = vld [vmem:[#allocation10 + $0x14] ss:$8 sps:$4 sm:$0xff]  }
 0x1f8   : > { %4382 = vmatpush3.bf16.msra.mxu0 %v4993_v0  ;;  %2939 = vmatprep.mubr.bf16.mxu0 %v2161_v63  ;;  %v5058_v63 = vld [vmem:[#allocation8 + $0x2d8] ss:$12 sps:$4 sm:$0xff]  }
 0x1f9   : > { %4383 = vmatprep.subr.bf16.mxu0 %v4994_v2  ;;  %v5072_v0 = vld [vmem:[#allocation10 + $0x70] ss:$8 sps:$4 sm:$0xff]   ;;  %v5077_v2 = vld [vmem:[#allocation10 + $0x64] ss:$8 sps:$4 sm:$0xff]  }
 0x1fc   : > { %4384 = vmatpush3.bf16.msra.mxu0 %v4995_v3  ;;  %v5059_v3 = vld [vmem:[#allocation8 + $0x218] ss:$12 sps:$4 sm:$0xff]  }
 0x1fd   : > { %4385 = vmatprep.subr.bf16.mxu0 %v4999_v5  ;;  %v5060_v5 = vld [vmem:[#allocation8 + $0x2c0] ss:$12 sps:$4 sm:$0xff]  }
 0x200   : > { %4386 = vmatpush3.bf16.msra.mxu0 %v5000_v6  ;;  %v5075_v6 = vld [vmem:[#allocation10 + $0x60] ss:$8 sps:$4 sm:$0xff]  }
 0x201   : > { %4387 = vmatprep.subr.bf16.mxu0 %v5004_v7  ;;  %v5080_v7 = vld [vmem:[#allocation10 + $0x54] ss:$8 sps:$4 sm:$0xff]  }
 0x204   : > { %4388 = vmatpush3.bf16.msra.mxu0 %v5005_v8  ;;  %v5061_v8 = vld [vmem:[#allocation8 + $0x200] ss:$12 sps:$4 sm:$0xff]  }
 0x205   : > { %4389 = vmatprep.subr.bf16.mxu0 %v5009_v10  ;;  %v5062_v10 = vld [vmem:[#allocation8 + $0x2a8] ss:$12 sps:$4 sm:$0xff]  }
 0x208   : > { %4390 = vmatpush3.bf16.msra.mxu0 %v5010_v12  ;;  %v5078_v12 = vld [vmem:[#allocation10 + $0x50] ss:$8 sps:$4 sm:$0xff]  }
 0x209   : > { %4391 = vmatprep.subr.bf16.mxu0 %v5014_v13  ;;  %v5063_v13 = vld [vmem:[#allocation8 + $0x1e8] ss:$12 sps:$4 sm:$0xff]  }
 0x20c   : > { %4392 = vmatpush3.bf16.msra.mxu0 %v5015_v14  ;;  %v5064_v14 = vld [vmem:[#allocation8 + $0x290] ss:$12 sps:$4 sm:$0xff]  }
 0x20d   : > { %4393 = vmatprep.subr.bf16.mxu0 %v5019_v15  ;;  %v5065_v15 = vld [vmem:[#allocation8 + $0x1d0] ss:$12 sps:$4 sm:$0xff]  }
 0x210   : > { %4394 = vmatpush3.bf16.msra.mxu0 %v5020_v16  ;;  %v5066_v16 = vld [vmem:[#allocation8 + $0x278] ss:$12 sps:$4 sm:$0xff]  }
 0x211   : > { %4395 = vmatprep.subr.bf16.mxu0 %v5024_v17  ;;  %v5067_v17 = vld [vmem:[#allocation8 + $0x1b8] ss:$12 sps:$4 sm:$0xff]  }
 0x214   : > { %4396 = vmatpush3.bf16.msra.mxu0 %v5025_v18  ;;  %v5068_v18 = vld [vmem:[#allocation8 + $0x260] ss:$12 sps:$4 sm:$0xff]  }
 0x217   : > { %2940 = vmatmul.mubr.bf16.vlgmr.msra.gmra.mxu0 %v2160_v1  ;;  %v5074_v1 = vld [vmem:[#allocation10 + $0x74] ss:$8 sps:$4 sm:$0xff]  }
 0x218   : > { %3298 = vmatprep.subr.bf16.mxu0 %v5074_v1 }
 0x219   : > { %3299 = vmatpush1.bf16.msra.mxu0 %v5072_v0  ;;  %v5141_v0 = vld [vmem:[#allocation10 + $0x100] ss:$8 sps:$4 sm:$0xff]  }
 0x21a   : > { %3300 = vmatprep.subr.bf16.mxu0 %v5077_v2 }
 0x21d   : > { %3301 = vmatpush1.bf16.msra.mxu0 %v5075_v6 }
 0x21e   : > { %3302 = vmatprep.subr.bf16.mxu0 %v5080_v7 }
 0x221   : > { %3303 = vmatpush1.bf16.msra.mxu0 %v5078_v12 }
 0x227   : > { %v2057_v23 = vpop.f32.mrf.mxu0 }
 0x228   : > { %v2058_v38 = vadd.f32 %v2057_v23, %v2015_v34  ;;  %v5083_v23 = vld [vmem:[#allocation10 + $0x44] ss:$8 sps:$4 sm:$0xff]   ;;  %v5093_v34 = vld [vmem:[#allocation10] ss:$8 sps:$4 sm:$0xff]  }
 0x229   : > { %v2059_v26 = vpop.f32.mrf.mxu0  ;;  %3304 = vmatprep.subr.bf16.mxu0 %v5083_v23 }
 0x22a   : > { %v2060_v37 = vadd.f32 %v2059_v26, %v2017_v32  ;;  %3305 = vmatpush1.bf16.msra.mxu0 %v5081_v24  ;;  %v5086_v26 = vld [vmem:[#allocation10 + $0x34] ss:$8 sps:$4 sm:$0xff]   ;;  %v5095_v32 = vld [vmem:[#allocation10 + $0x4] ss:$8 sps:$4 sm:$0xff]  }
 0x22b   : > { %v2061_v30 = vpop.f32.mrf.mxu0  ;;  %3306 = vmatprep.subr.bf16.mxu0 %v5086_v26 }
 0x22c   : > { %v2062_v42 = vadd.f32 %v2061_v30, %v2019_v36  ;;  %v5089_v30 = vld [vmem:[#allocation10 + $0x24] ss:$8 sps:$4 sm:$0xff]  }
 0x22d   : > { %v2063_v31 = vpop.f32.mrf.mxu0  ;;  %v5101_v36 = vld [vmem:[#allocation10 + $0xe4] ss:$8 sps:$4 sm:$0xff]  }
 0x22e   : > { %v2064_v47 = vadd.f32 %v2063_v31, %v2021_v41  ;;  %3307 = vmatpush1.bf16.msra.mxu0 %v5084_v27  ;;  %v5090_v31 = vld [vmem:[#allocation10 + $0x10] ss:$8 sps:$4 sm:$0xff]   ;;  %v5110_v41 = vld [vmem:[#allocation10 + $0xb4] ss:$8 sps:$4 sm:$0xff]  }
 0x22f   : > { %v2143_v33 = vpop.f32.mrf.mxu0  ;;  %3308 = vmatprep.subr.bf16.mxu0 %v5089_v30 }
 0x230   : > { %v2100_v35 = vpop.f32.mrf.mxu1 }
 0x231   : > { %v2145_v40 = vpop.f32.mrf.mxu0  ;;  %v2101_v44 = vadd.f32 %v2100_v35, %v2058_v38  ;;  %v5098_v35 = vld [vmem:[#allocation10 + $0xf4] ss:$8 sps:$4 sm:$0xff]  }
 0x232   : > { %v2102_v39 = vpop.f32.mrf.mxu1  ;;  %3309 = vmatpush1.bf16.msra.mxu0 %v5087_v29  ;;  %v5104_v38 = vld [vmem:[#allocation10 + $0xd4] ss:$8 sps:$4 sm:$0xff]  }
 0x233   : > { %v2103_v43 = vadd.f32 %v2102_v39, %v2060_v37  ;;  %v2147_v46 = vpop.f32.mrf.mxu0  ;;  %v2144_v54 = vadd.f32 %v2143_v33, %v2101_v44  ;;  %3310 = vmatprep.subr.bf16.mxu0 %v5092_v4  ;;  %v5096_v33 = vld [vmem:[#allocation10 + $0xf0] ss:$8 sps:$4 sm:$0xff]   ;;  %v5099_v37 = vld [vmem:[#allocation10 + $0xe0] ss:$8 sps:$4 sm:$0xff]   ;;  %v5107_v39 = vld [vmem:[#allocation10 + $0xc4] ss:$8 sps:$4 sm:$0xff]  }
 0x234   : > { %v2104_v45 = vpop.f32.mrf.mxu1  ;;  %v5111_v44 = vld [vmem:[#allocation10 + $0xa0] ss:$8 sps:$4 sm:$0xff]  }
 0x235   : > { %v2105_v9 = vadd.f32 %v2104_v45, %v2062_v42  ;;  %v2149_v49 = vpop.f32.mrf.mxu0  ;;  %v2146_v50 = vadd.f32 %v2145_v40, %v2103_v43  ;;  %v2154_v59 = vmax.f32 %v2144_v54, 0.0  ;;  %v5105_v40 = vld [vmem:[#allocation10 + $0xc0] ss:$8 sps:$4 sm:$0xff]   ;;  %v5108_v42 = vld [vmem:[#allocation10 + $0xb0] ss:$8 sps:$4 sm:$0xff]  }
 0x236   : > { %v2106_v48 = vpop.f32.mrf.mxu1  ;;  %3311 = vmatpush1.bf16.msra.mxu0 %v5090_v31  ;;  %v5113_v43 = vld [vmem:[#allocation10 + $0xa4] ss:$8 sps:$4 sm:$0xff]   ;;  %v5116_v45 = vld [vmem:[#allocation10 + $0x94] ss:$8 sps:$4 sm:$0xff]   ;;  %v5126_v54 = vld [vmem:[#allocation10 + $0x150] ss:$8 sps:$4 sm:$0xff]  }
 0x237   : > { %v2148_v52 = vadd.f32 %v2147_v46, %v2105_v9  ;;  %v2107_v53 = vadd.f32 %v2106_v48, %v2064_v47  ;;  %v2155_v57 = vmax.f32 %v2146_v50, 0.0  ;;  %3312 = vmatprep.subr.bf16.mxu0 %v5095_v32  ;;  %v5114_v46 = vld [vmem:[#allocation10 + $0x90] ss:$8 sps:$4 sm:$0xff]   ;;  %v5119_v47 = vld [vmem:[#allocation10 + $0x84] ss:$8 sps:$4 sm:$0xff]  }
 0x238   : > { %v5117_v9 = vld [vmem:[#allocation10 + $0x80] ss:$8 sps:$4 sm:$0xff]   ;;  %v5122_v48 = vld [vmem:[#allocation10 + $0x174] ss:$8 sps:$4 sm:$0xff]   ;;  %v5125_v50 = vld [vmem:[#allocation10 + $0x164] ss:$8 sps:$4 sm:$0xff]  }
 0x239   : > { %v2150_v55 = vadd.f32 %v2149_v49, %v2107_v53  ;;  %v2158_v56 = vmax.f32 %v2148_v52, 0.0  ;;  %v5120_v49 = vld [vmem:[#allocation10 + $0x170] ss:$8 sps:$4 sm:$0xff]   ;;  %v5123_v52 = vld [vmem:[#allocation10 + $0x160] ss:$8 sps:$4 sm:$0xff]  }
 0x23a   : > { %3313 = vmatpush1.bf16.msra.mxu0 %v5093_v34  ;;  %v5128_v53 = vld [vmem:[#allocation10 + $0x154] ss:$8 sps:$4 sm:$0xff]  }
 0x23b   : > { %v2159_v58 = vmax.f32 %v2150_v55, 0.0  ;;  %v2162_v62 = vpack.c.bf16 %v2158_v56, %v2154_v59  ;;  %3314 = vmatprep.subr.bf16.mxu0 %v5098_v35  ;;  %v5131_v55 = vld [vmem:[#allocation10 + $0x144] ss:$8 sps:$4 sm:$0xff]   ;;  %v5129_v56 = vld [vmem:[#allocation10 + $0x140] ss:$8 sps:$4 sm:$0xff]  }
 0x23c   : > { %v5137_v59 = vld [vmem:[#allocation10 + $0x124] ss:$8 sps:$4 sm:$0xff]  }
 0x23d   : > { %v2163_v60 = vpack.c.bf16 %v2159_v58, %v2155_v57  ;;  %v5134_v57 = vld [vmem:[#allocation10 + $0x134] ss:$8 sps:$4 sm:$0xff]   ;;  %v5132_v58 = vld [vmem:[#allocation10 + $0x130] ss:$8 sps:$4 sm:$0xff]  }
 0x23e   : > { %3315 = vmatpush2.bf16.msra.mxu0 %v5096_v33 }
 0x23f   : > { %2896 = vmatprep.mubr.bf16.mxu1 %v2163_v60  ;;  %3316 = vmatprep.subr.bf16.mxu0 %v5101_v36 }
 0x240   : > { %2897 = vmatmul.mubr.bf16.vlgmr.msra.gmra.mxu1 %v2162_v62 }
 0x241   : > { %4404 = vmatpush3.bf16.msra.mxu1 %v5057_v61  ;;  %2980 = vmatprep.mubr.bf16.mxu1 %v2163_v60  ;;  %v5135_v60 = vld [vmem:[#allocation10 + $0x120] ss:$8 sps:$4 sm:$0xff]   ;;  %v5140_v61 = vld [vmem:[#allocation10 + $0x114] ss:$8 sps:$4 sm:$0xff]  }
 0x242   : > { %4405 = vmatprep.subr.bf16.mxu1 %v5058_v63  ;;  %3317 = vmatpush2.bf16.msra.mxu0 %v5099_v37  ;;  %v5143_v63 = vld [vmem:[#allocation10 + $0x104] ss:$8 sps:$4 sm:$0xff]  }
 0x243   : > { %3318 = vmatprep.subr.bf16.mxu0 %v5104_v38 }
 0x245   : > { %4406 = vmatpush3.bf16.msra.mxu1 %v5059_v3  ;;  %v2292_v3 = vld [vmem:[%s5918_s4] sm:$0x7] }
 0x246   : > { %4407 = vmatprep.subr.bf16.mxu1 %v5060_v5  ;;  %v2301_v6 = vrot.slane %v2292_v3, %v5807_v28  ;;  %v2297_v7 = vrot.slane %v2292_v3, %v5810_v51  ;;  %v2305_v36 = vrot.slane %v2292_v3, %v779_v22  ;;  %v5148_v22 = vld [vmem:[#allocation11 + $0x68] sm:$0xff]  }
 0x247   : > { %v5162_v3 = vld [vmem:[#allocation13 + $0x28] sm:$0xff]  }
 0x249   : > { %4408 = vmatpush3.bf16.msra.mxu1 %v5061_v8 }
 0x24a   : > { %4409 = vmatprep.subr.bf16.mxu1 %v5062_v10 }
 0x24d   : > { %4410 = vmatpush3.bf16.msra.mxu1 %v5063_v13 }
 0x24e   : > { %4411 = vmatprep.subr.bf16.mxu1 %v5064_v14 }
 0x251   : > { %4412 = vmatpush3.bf16.msra.mxu1 %v5065_v15 }
 0x252   : > { %4413 = vmatprep.subr.bf16.mxu1 %v5066_v16 }
 0x255   : > { %4414 = vmatpush3.bf16.msra.mxu1 %v5067_v17 }
 0x256   : > { %4415 = vmatprep.subr.bf16.mxu1 %v5068_v18 }
 0x259   : > { %4416 = vmatpush3.bf16.msra.mxu1 %v5069_v19 }
 0x25a   : > { %4417 = vmatprep.subr.bf16.mxu1 %v5070_v20 }
 0x25d   : > { %4418 = vmatpush3.bf16.msra.mxu1 %v5071_v21 }
 0x25e   : > { %3341 = vmatprep.subr.bf16.mxu1 %v5122_v48 }
 0x260   : > { %2981 = vmatmul.mubr.bf16.vlgmr.msra.gmra.mxu1 %v2162_v62  ;;  %v5138_v62 = vld [vmem:[#allocation10 + $0x110] ss:$8 sps:$4 sm:$0xff]  }
 0x261   : > { %3373 = vmatprep.mubr.bf16.mxu1 %v5488_v11  ;;  %v5102_v11 = vld [vmem:[#allocation10 + $0xd0] ss:$8 sps:$4 sm:$0xff]   ;;  %3342 = vmatpush1.bf16.msra.mxu1 %v5120_v49 }
 0x262   : > { %3319 = vmatpush2.bf16.msra.mxu0 %v5102_v11  ;;  %3343 = vmatprep.subr.bf16.mxu1 %v5125_v50  ;;  %v5144_v49 = vld [vmem:[#allocation11 + $0x78] sm:$0xff]  }
 0x263   : > { %3320 = vmatprep.subr.bf16.mxu0 %v5107_v39  ;;  %v5145_v50 = vld [vmem:[#allocation11 + $0x38] sm:$0xff]  }
 0x265   : > { %3344 = vmatpush1.bf16.msra.mxu1 %v5123_v52  ;;  %v5146_v52 = vld [vmem:[#allocation11 + $0x70] sm:$0xff]  }
 0x266   : > { %3321 = vmatpush2.bf16.msra.mxu0 %v5105_v40  ;;  %3345 = vmatprep.subr.bf16.mxu1 %v5128_v53  ;;  %v5149_v53 = vld [vmem:[#allocation11 + $0x28] sm:$0xff]  }
 0x267   : > { %3322 = vmatprep.subr.bf16.mxu0 %v5110_v41 }
 0x269   : > { %3346 = vmatpush1.bf16.msra.mxu1 %v5126_v54  ;;  %v5150_v54 = vld [vmem:[#allocation11 + $0x60] sm:$0xff]  }
 0x26a   : > { %3323 = vmatpush2.bf16.msra.mxu0 %v5108_v42  ;;  %3347 = vmatprep.subr.bf16.mxu1 %v5131_v55  ;;  %v5151_v55 = vld [vmem:[#allocation11 + $0x20] sm:$0xff]  }
 0x26b   : > { %3324 = vmatprep.subr.bf16.mxu0 %v5113_v43 }
 0x26d   : > { %3348 = vmatpush1.bf16.msra.mxu1 %v5129_v56  ;;  %v5152_v56 = vld [vmem:[#allocation11 + $0x58] sm:$0xff]  }
 0x26e   : > { %3325 = vmatpush2.bf16.msra.mxu0 %v5111_v44  ;;  %3349 = vmatprep.subr.bf16.mxu1 %v5134_v57  ;;  %v5153_v57 = vld [vmem:[#allocation11 + $0x18] sm:$0xff]  }
 0x26f   : > { %3326 = vmatprep.subr.bf16.mxu0 %v5116_v45 }
 0x271   : > { %3350 = vmatpush1.bf16.msra.mxu1 %v5132_v58  ;;  %v5154_v58 = vld [vmem:[#allocation11 + $0x50] sm:$0xff]  }
 0x272   : > { %3327 = vmatpush2.bf16.msra.mxu0 %v5114_v46  ;;  %3351 = vmatprep.subr.bf16.mxu1 %v5137_v59  ;;  %v5155_v59 = vld [vmem:[#allocation11 + $0x10] sm:$0xff]  }
 0x273   : > { %3328 = vmatprep.subr.bf16.mxu0 %v5119_v47 }
 0x275   : > { %3352 = vmatpush1.bf16.msra.mxu1 %v5135_v60  ;;  %v5156_v60 = vld [vmem:[#allocation11 + $0x48] sm:$0xff]  }
 0x276   : > { %3329 = vmatpush2.bf16.msra.mxu0 %v5117_v9  ;;  %3353 = vmatprep.subr.bf16.mxu1 %v5140_v61  ;;  %v5157_v61 = vld [vmem:[#allocation11 + $0x8] sm:$0xff]  }
 0x279   : > { %3354 = vmatpush1.bf16.msra.mxu1 %v5138_v62  ;;  %v5158_v62 = vld [vmem:[#allocation11 + $0x40] sm:$0xff]  }
 0x27a   : > { %3355 = vmatprep.subr.bf16.mxu1 %v5143_v63  ;;  %v5159_v63 = vld [vmem:[#allocation11] sm:$0xff]  }
 0x27d   : > { %3356 = vmatpush1.bf16.msra.mxu1 %v5141_v0  ;;  %v5160_v0 = vld [vmem:[#allocation13 + $0x38] sm:$0xff]  }
 0x27e   : > { %4425 = vmatprep.subr.bf16.mxu1 %v5144_v49 }
 0x2b7   : > { %v2855_v1 = vpop.f32.mrf.mxu0 }
 0x2b8   : > { %v2856_v15 = vadd.f32 %v2855_v1, %v2297_v7  ;;  %v5489_v1 = vmov 0.0  }
 0x2b9   : > { %v2857_v2 = vpop.f32.mrf.mxu0  ;;  %4465 = vmatprep.subr.bf16.mxu0 %v5489_v1 }
 0x2ba   : > { %v2858_v13 = vadd.f32 %v2857_v2, %v2301_v6  ;;  %v5161_v2 = vld [vmem:[#allocation13 + $0x30] sm:$0xff]  }
 0x2bb   : > { %v2859_v5 = vpop.f32.mrf.mxu0 }
 0x2bc   : > { %v2860_v14 = vadd.f32 %v2859_v5, %v2297_v7  ;;  %v5163_v5 = vld [vmem:[#allocation13 + $0x20] sm:$0xff]  }
 0x2bd   : > { %v2861_v10 = vpop.f32.mrf.mxu0 }
 0x2be   : > { %v2862_v17 = vadd.f32 %v2861_v10, %v2301_v6 }
 0x2d7   : > { %v4397_v31 = vpop.f32.mrf.mxu0 }
 0x2d9   : > { %v4398_v32 = vpop.f32.mrf.mxu0 }
 0x2da   : > { %v4399_v37 = vadd.f32 %v4398_v32, %v4397_v31 }
 0x2db   : > { %v4400_v34 = vpop.f32.mrf.mxu0 }
 0x2dc   : > { %v2942_v41 = vadd.f32 %v4399_v37, %v2305_v36  ;;  %v5168_v37 = vld [vmem:[#allocation14 + $0x38] sm:$0xff]  }
 0x2dd   : > { %v4401_v35 = vpop.f32.mrf.mxu0 }
 0x2de   : > { %v4402_v11 = vadd.f32 %v4401_v35, %v4400_v34  ;;  %v5165_v35 = vld [vmem:[#allocation13 + $0x10] sm:$0xff]  }
 0x2e0   : > { %v2945_v43 = vadd.f32 %v4402_v11, %v2305_v36  ;;  %v5167_v36 = vld [vmem:[#allocation13] sm:$0xff]   ;;  %v5170_v11 = vld [vmem:[#allocation14 + $0x28] sm:$0xff]  }
 0x300   : > { %v2898_v8 = vpop.f32.mrf.mxu1 }
 0x301   : > { %v2899_v20 = vadd.f32 %v2898_v8, %v2856_v15  ;;  %v3046_v8 = vld [vmem:[%s5920_s6] sm:$0x3] }
 0x302   : > { %v2900_v12 = vpop.f32.mrf.mxu1 }
 0x303   : > { %v2901_v18 = vadd.f32 %v2900_v12, %v2858_v13  ;;  %v2989_v29 = vmax.f32 %v2899_v20, 0.0  ;;  %v3055_v12 = vrot.slane %v3046_v8, %v5807_v28  ;;  %v3051_v13 = vrot.slane %v3046_v8, %v5810_v51  ;;  %v5164_v51 = vld [vmem:[#allocation13 + $0x18] sm:$0xff]  }
 0x304   : > { %v2902_v16 = vpop.f32.mrf.mxu1 }
 0x305   : > { %v2903_v19 = vadd.f32 %v2902_v16, %v2860_v14  ;;  %v2990_v26 = vmax.f32 %v2901_v18, 0.0 }
 0x306   : > { %v2904_v21 = vpop.f32.mrf.mxu1 }
 0x307   : > { %v2905_v23 = vadd.f32 %v2904_v21, %v2862_v17  ;;  %v2992_v24 = vmax.f32 %v2903_v19, 0.0 }
 0x309   : > { %v2993_v27 = vmax.f32 %v2905_v23, 0.0  ;;  %v2995_v4 = vpack.c.bf16 %v2992_v24, %v2989_v29 }
 0x30b   : > { %v2996_v30 = vpack.c.bf16 %v2993_v27, %v2990_v26 }
 0x30d   : > { %3330 = vmatprep.mubr.bf16.mxu0 %v2996_v30 }
 0x30e   : > { %3331 = vmatmul.mubr.bf16.vlgmr.msra.gmra.mxu0 %v2995_v4 }
 0x30f   : > { %4466 = vmatpush3.bf16.msra.mxu0 %v5160_v0  ;;  %4481 = vmatprep.mubr.msk.bf16.mxu0 %vm5490_vm1, %v5489_v1 }
 0x310   : > { %4467 = vmatprep.subr.bf16.mxu0 %v5489_v1 }
 0x313   : > { %4468 = vmatpush3.bf16.msra.mxu0 %v5161_v2 }
 0x314   : > { %4469 = vmatprep.subr.bf16.mxu0 %v5489_v1 }
 0x317   : > { %4470 = vmatpush3.bf16.msra.mxu0 %v5162_v3 }
 0x318   : > { %4471 = vmatprep.subr.bf16.mxu0 %v5489_v1 }
 0x31b   : > { %4472 = vmatpush3.bf16.msra.mxu0 %v5163_v5 }
 0x31c   : > { %4473 = vmatprep.subr.bf16.mxu0 %v5489_v1 }
 0x31f   : > { %4474 = vmatpush3.bf16.msra.mxu0 %v5164_v51 }
 0x320   : > { %v4419_v33 = vpop.f32.mrf.mxu1  ;;  %4475 = vmatprep.subr.bf16.mxu0 %v5489_v1 }
 0x322   : > { %v4420_v38 = vpop.f32.mrf.mxu1 }
 0x323   : > { %v4421_v39 = vadd.f32 %v4420_v38, %v4419_v33  ;;  %4476 = vmatpush3.bf16.msra.mxu0 %v5165_v35  ;;  %v5166_v33 = vld [vmem:[#allocation13 + $0x8] sm:$0xff]   ;;  %v5169_v38 = vld [vmem:[#allocation14 + $0x30] sm:$0xff]  }
 0x324   : > { %v4422_v40 = vpop.f32.mrf.mxu1  ;;  %4477 = vmatprep.subr.bf16.mxu0 %v5489_v1 }
 0x325   : > { %v2983_v44 = vadd.f32 %v4421_v39, %v2942_v41  ;;  %v5171_v39 = vld [vmem:[#allocation14 + $0x20] sm:$0xff]  }
 0x326   : > { %v4423_v42 = vpop.f32.mrf.mxu1 }
 0x327   : > { %v4424_v45 = vadd.f32 %v4423_v42, %v4422_v40  ;;  %v2991_v47 = vmax.f32 %v2983_v44, 0.0  ;;  %4478 = vmatpush3.bf16.msra.mxu0 %v5166_v33  ;;  %v5172_v40 = vld [vmem:[#allocation14 + $0x18] sm:$0xff]   ;;  %v4331_v44 = vld [vmem:[%s5922_s8] ss:$0 sm:$0xff] }
 0x328   : > { %4479 = vmatprep.subr.bf16.mxu0 %v5489_v1 }
 0x329   : > { %v2986_v46 = vadd.f32 %v4424_v45, %v2945_v43 }
 0x32b   : > { %v2994_v9 = vmax.f32 %v2986_v46, 0.0  ;;  %4480 = vmatpush3.bf16.msra.mxu0 %v5167_v36 }
 0x32d   : > { %v2997_v48 = vpack.c.bf16 %v2994_v9, %v2991_v47 }
 0x32f   : > { %3374 = vmatmul.mubr.bf16.vlgmr.msra.gmra.mxu1 %v2997_v48 }
 0x330   : > { %4426 = vmatpush3.bf16.msra.mxu1 %v5145_v50 }
 0x331   : > { %4427 = vmatprep.subr.bf16.mxu1 %v5146_v52 }
 0x334   : > { %4428 = vmatpush3.bf16.msra.mxu1 %v5147_v25  ;;  %v5173_v25 = vld [vmem:[#allocation14 + $0x10] sm:$0xff]  }
 0x335   : > { %4429 = vmatprep.subr.bf16.mxu1 %v5148_v22  ;;  %v5174_v22 = vld [vmem:[#allocation14 + $0x8] sm:$0xff]  }
 0x338   : > { %4430 = vmatpush3.bf16.msra.mxu1 %v5149_v53  ;;  %v5175_v53 = vld [vmem:[#allocation14] sm:$0xff]  }
 0x339   : > { %4431 = vmatprep.subr.bf16.mxu1 %v5150_v54  ;;  %v4348_v54 = vld [vmem:[%s5924_s10] ss:$0 sm:$0xff] }
 0x33c   : > { %4432 = vmatpush3.bf16.msra.mxu1 %v5151_v55 }
 0x33d   : > { %4433 = vmatprep.subr.bf16.mxu1 %v5152_v56 }
 0x340   : > { %4434 = vmatpush3.bf16.msra.mxu1 %v5153_v57 }
 0x341   : > { %4435 = vmatprep.subr.bf16.mxu1 %v5154_v58 }
 0x344   : > { %4436 = vmatpush3.bf16.msra.mxu1 %v5155_v59 }
 0x345   : > { %4437 = vmatprep.subr.bf16.mxu1 %v5156_v60 }
 0x348   : > { %4438 = vmatpush3.bf16.msra.mxu1 %v5157_v61 }
 0x349   : > { %4439 = vmatprep.subr.bf16.mxu1 %v5158_v62 }
 0x34c   : > { %4440 = vmatpush3.bf16.msra.mxu1 %v5159_v63 }
 0x34d   : > { %4485 = vmatprep.subr.bf16.mxu1 %v5489_v1 }
 0x3ce   : > { %v3332_v6 = vpop.f32.mrf.mxu0 }
 0x3cf   : > { %v3333_v19 = vadd.f32 %v3332_v6, %v3051_v13 }
 0x3d0   : > { %v3334_v7 = vpop.f32.mrf.mxu0 }
 0x3d1   : > { %v3335_v17 = vadd.f32 %v3334_v7, %v3055_v12 }
 0x3d2   : > { %v3336_v10 = vpop.f32.mrf.mxu0 }
 0x3d3   : > { %v3337_v18 = vadd.f32 %v3336_v10, %v3051_v13 }
 0x3d4   : > { %v3338_v15 = vpop.f32.mrf.mxu0 }
 0x3d5   : > { %v3339_v21 = vadd.f32 %v3338_v15, %v3055_v12 }
 0x3ef   : > { %v3375_v14 = vpop.f32.mrf.mxu1 }
 0x3f0   : > { %v3376_v26 = vadd.f32 %v3375_v14, %v3333_v19 }
 0x3f1   : > { %v3377_v16 = vpop.f32.mrf.mxu1 }
 0x3f2   : > { %v3378_v23 = vadd.f32 %v3377_v16, %v3335_v17  ;;  %v3384_v32 = vmax.f32 %v3376_v26, 0.0 }
 0x3f3   : > { %v3379_v20 = vpop.f32.mrf.mxu1 }
 0x3f4   : > { %v3380_v24 = vadd.f32 %v3379_v20, %v3337_v18  ;;  %v3385_v4 = vmax.f32 %v3378_v23, 0.0 }
 0x3f5   : > { %v3381_v27 = vpop.f32.mrf.mxu1 }
 0x3f6   : > { %v3382_v29 = vadd.f32 %v3381_v27, %v3339_v21  ;;  %v3386_v30 = vmax.f32 %v3380_v24, 0.0 }
 0x3f8   : > { %v3387_v31 = vmax.f32 %v3382_v29, 0.0  ;;  %v3388_v34 = vpack.c.bf16 %v3386_v30, %v3384_v32 }
 0x3fa   : > { %v3389_v28 = vpack.c.bf16 %v3387_v31, %v3385_v4 }
 0x3fc   : > { %3557 = vmatprep.mubr.bf16.mxu1 %v3389_v28 }
 0x3fd   : > { %3558 = vmatmul.mubr.bf16.vlgmr.msra.gmra.mxu1 %v3388_v34 }
 0x3fe   : > { %4501 = vmatprep.mubr.msk.bf16.mxu1 %vm5490_vm1, %v5489_v1  ;;  %4486 = vmatpush3.bf16.msra.mxu1 %v5168_v37 }
 0x3ff   : > { %4487 = vmatprep.subr.bf16.mxu1 %v5489_v1 }
 0x402   : > { %4488 = vmatpush3.bf16.msra.mxu1 %v5169_v38 }
 0x403   : > { %4489 = vmatprep.subr.bf16.mxu1 %v5489_v1 }
 0x406   : > { %4490 = vmatpush3.bf16.msra.mxu1 %v5170_v11 }
 0x407   : > { %4491 = vmatprep.subr.bf16.mxu1 %v5489_v1 }
 0x40a   : > { %4492 = vmatpush3.bf16.msra.mxu1 %v5171_v39 }
 0x40b   : > { %4493 = vmatprep.subr.bf16.mxu1 %v5489_v1 }
 0x40e   : > { %4494 = vmatpush3.bf16.msra.mxu1 %v5172_v40 }
 0x40f   : > { %4495 = vmatprep.subr.bf16.mxu1 %v5489_v1 }
 0x412   : > { %4496 = vmatpush3.bf16.msra.mxu1 %v5173_v25 }
 0x413   : > { %4497 = vmatprep.subr.bf16.mxu1 %v5489_v1 }
 0x416   : > { %4498 = vmatpush3.bf16.msra.mxu1 %v5174_v22 }
 0x417   : > { %4499 = vmatprep.subr.bf16.mxu1 %v5489_v1  ;;  %v4357_v1 = vld [vmem:[%s5926_s12] ss:$0 sm:$0xff] }
 0x41a   : > { %4500 = vmatpush3.bf16.msra.mxu1 %v5175_v53 }
 0x4bd   : > { %v4441_v41 = vpop.f32.mrf.mxu1 }
 0x4bf   : > { %v4442_v42 = vpop.f32.mrf.mxu1 }
 0x4c0   : > { %v4443_v43 = vadd.f32 %v4442_v42, %v4441_v41 }
 0x4c1   : > { %v4444_v45 = vpop.f32.mrf.mxu1 }
 0x4c2   : > { %v3560_v47 = vadd.f32 %v4443_v43, %v4331_v44 }
 0x4c3   : > { %v4445_v46 = vpop.f32.mrf.mxu1 }
 0x4c4   : > { %v4446_v9 = vadd.f32 %v4445_v46, %v4444_v45  ;;  %v3566_v49 = vmax.f32 %v3560_v47, 0.0 }
 0x4c6   : > { %v3563_v48 = vadd.f32 %v4446_v9, %v4331_v44 }
 0x4c8   : > { %v3567_v50 = vmax.f32 %v3563_v48, 0.0 }
 0x4ca   : > { %v3568_v52 = vpack.c.bf16 %v3567_v50, %v3566_v49 }
 0x4cc   : > { %4482 = vmatmul.mubr.bf16.vlgmr.msra.gmra.mxu0 %v3568_v52 }
 0x58c   : > { %v3674_v55 = vpop.f32.mrf.mxu0 }
 0x58d   : > { %v3675_v57 = vadd.f32 %v4348_v54, %v3674_v55 }
 0x58e   : > { %v4483_v56 = vpop.f32.mrf.mxu0 }
 0x58f   : > { %v3681_v61 = vmax.f32 %v3675_v57, 0.0 }
 0x590   : > { %v3677_v58 = vpop.f32.mrf.mxu0 }
 0x591   : > { %v3678_v59 = vadd.f32 %v4348_v54, %v3677_v58 }
 0x592   : > { %v4484_v60 = vpop.f32.mrf.mxu0 }
 0x593   : > { %v3682_v62 = vmax.f32 %v3678_v59, 0.0 }
 0x595   : > { %v3683_v63 = vpack.c.bf16 %v3682_v62, %v3681_v61 }
 0x597   : > { %4502 = vmatmul.mubr.bf16.vlgmr.msra.gmra.mxu1 %v3683_v63 }
 0x657   : > { %v3789_v0 = vpop.f32.mrf.mxu1 }
 0x658   : > { %v3790_v5 = vadd.f32 %v4357_v1, %v3789_v0 }
 0x659   : > { %v4503_v2 = vpop.f32.mrf.mxu1 }
 0x65b   : > { %v3792_v3 = vpop.f32.mrf.mxu1 }
 0x65c   : > { %v3793_v6 = vadd.f32 %v4357_v1, %v3792_v3 }
 0x65d   : > { %v4504_v7 = vpop.f32.mrf.mxu1 }
 0x65e   : > { %v4379_v8 = vpack.c.bf16 %v3793_v6, %v3790_v5 }
 0x660   : > { %4380 = vst [vmem:[%s559_s1] sm:$0xff] %v4379_v8  }
 0x661   : > { %5401 = shalt.err (!%p5398_p12)
}
 0x662   : > { %s5402_s7 = scalar_lea.hbm %s5871_s30, 128  ;;  %s5406_s1 = scalar_lea.hbm %s5970_s15, 256 }
 0x663   : > { %p5403_p13 = scmp.ne.s32.totalorder %s5871_s30, %s5402_s7  ;;  %p5407_p2 = scmp.lt.s32.totalorder %s5871_s30, %s5970_s15 }
 0x664   : > { %p5408_p5 = scmp.lt.s32.totalorder %s5406_s1, %s5402_s7 }
 0x665   : > { %p5404_p3 = pnand %p5403_p13, %p5971_p11 }
 0x666   : > { %p5409_p8 = por %p5408_p5, %p5407_p2 }
 0x667   : > { %p5405_p4 = pneg %p5404_p3 }
 0x669   : > { %p5410_p10 = pnand %p5409_p8, %p5405_p4 }
 0x66b   : > { %5413 = shalt.err (!%p5410_p10)
}
 0x66c   : > { %s5492_s3 = smov 64   ;;  %s5493_s23 = smov 4  }
 0x66d   : > { %4538 = dma.vmem_to_hbm [thread:$0]  (%p5971_p11), %s5866_s22, 128, %s5871_s30, %s3807_s19, %s5492_s3, %s5492_s3, %s5493_s23  }
 0x66e PF: > { %s3835_s14 = sand.u32 1, %s5456_s25   ;;  %p5972_p0 = scmp.ne.s32.totalorder %s5958_s29, 0 }
 0x66f   : > { %p5973_p1 = scmp.ge.s32.totalorder %s5468_s28, 2  ;;  %s3836_s17 = scalar_lea.sflag [#allocation4], %s3835_s14 }
 0x671   : > { %p4567_p7 = pnand %p5973_p1, %p5972_p0 }
 0x673   : > { %p4568_p9 = pneg %p4567_p7 }
 0x675   : > { %5451 = dma.done.wait (%p4568_p9), %s3836_s17, 128  }
 0x676   : > { %5453 = vsyncadd (%p4568_p9), %s3836_s17, 4294967168  ;;  %p30_p6 = scmp.ge.s32.totalorder %s5679_s21, 4   ;;  %s5974_s25 = smov %s5460_s26 }
 0x677   : > { %s5975_s26 = smov %s5464_s27  ;;  %s5976_s27 = smov %s5691_s13 }
 0x678   : > { %s5977_s28 = smov %s5679_s21  ;;  %32 = sbr.rel (!%p30_p6) target bundleno = 17 (0x11), region = 145 }
 0x67d   :  { %3841 = vsyncpa [#allocation3], 1 }
 0x67e   :  { %3843 = vsyncpa [#allocation3 + $0x1], 1 }
 0x67f   :  { %3844 = vsyncpa [#allocation6], 1 }
 0x680   :  { %3845 = vsyncpa [#allocation9], 1 }
 0x681   :  { %3846 = vsyncpa [#allocation12], 1 }
 0x682   :  { %3847 = vsyncpa [#allocation15], 1 }
 0x683   :  { %3848 = vsyncpa [#allocation4], 1 }
 0x684   :  { %3850 = vsyncpa [#allocation4 + $0x1], 1 }

</bundles_post_ra>
